<compile_context>
chip_gen: v7x
topology: tpu7x:2x2x1
jax: 0.10.0
libtpu: 0.0.40
codegen_flags: <defaults>
</compile_context>

<pallas_src>
import math

import jax
import jax.numpy as jnp
from jax.experimental import pallas as pl
from jax.experimental.pallas import tpu as pltpu

# ----------------------- small synthetic model config -----------------------
B, S, H = 2, 8, 32          # batch, sequence, hidden
NH, HD = 4, 8               # heads, head dim (NH * HD == H)
I = 64                      # FFN intermediate size
L = 2                       # number of transformer layers
VOCAB, MAXPOS, NTYPES = 64, 32, 2
EPS = 1e-12                 # BERT layernorm eps
NEG = -1e9                  # additive mask value for padded keys
SCALE = 1.0 / math.sqrt(HD)
TB = 1                      # batch tile per grid step (attention is per-sequence, so TB == 1)
TS = TB * S                 # tokens per batch tile

LAYER_KEYS = ("wqkv", "bqkv", "wo", "bo", "ln1g", "ln1b",
              "w1", "b1", "w2", "b2", "ln2g", "ln2b")


# ------------------------------ kernel helpers -------------------------------
def _layer_norm(x, gamma, beta):
    mu = jnp.mean(x, axis=-1, keepdims=True)
    var = jnp.mean((x - mu) ** 2, axis=-1, keepdims=True)
    return (x - mu) * jax.lax.rsqrt(var + EPS) * gamma + beta


def _gelu(x):
    # TODO(synk): BERT/DPR uses exact erf-GELU; tanh approximation kept for robust Mosaic lowering.
    return 0.5 * x * (1.0 + jnp.tanh(0.7978845608028654 * (x + 0.044715 * x * x * x)))


def _split_heads(x):
    # (TS, H) -> (NH, TS, HD): static lane slices stacked on a new LEADING head axis, so the
    # attention matmuls below are plain leading-batch dot_generals (the known-good TPU pattern).
    return jnp.stack([x[:, n * HD:(n + 1) * HD] for n in range(NH)], axis=0)


def _merge_heads(x):
    # (NH, TS, HD) -> (TS, H) via static lane concatenation.
    return jnp.concatenate([x[n] for n in range(NH)], axis=-1)


# --------------------------------- kernel ------------------------------------
def dpr_fused_kernel(emb_ref, bias_ref, eg_ref, eb_ref,
                     wqkv_ref, bqkv_ref, wo_ref, bo_ref, ln1g_ref, ln1b_ref,
                     w1_ref, b1_ref, w2_ref, b2_ref, ln2g_ref, ln2b_ref,
                     o_ref, x_sc):
    l = pl.program_id(1)

    # First layer step for this batch tile: embedding LayerNorm into the resident scratch.
    @pl.when(l == 0)
    def _():
        x_sc[...] = _layer_norm(emb_ref[...], eg_ref[...], eb_ref[...])

    x = x_sc[...]                                  # (TS, H) f32, resident across the layer axis
    bias = bias_ref[...]                           # (1, 1, S) additive key-padding bias

    # ---- attention: fused QKV projection (bf16 MXU feed, f32 accumulation) ----
    qkv = jnp.dot(x.astype(jnp.bfloat16), wqkv_ref[0],
                  preferred_element_type=jnp.float32) + bqkv_ref[0]        # (TS, 3H)
    qh = _split_heads(qkv[:, 0:H])                 # (NH, S, HD) — 1/sqrt(HD) folded into wqkv/bqkv
    kh = _split_heads(qkv[:, H:2 * H])             # (NH, S, HD)
    vh = _split_heads(qkv[:, 2 * H:3 * H])         # (NH, S, HD)

    # Batched per-head attention (head axis = leading batch dim of the dot_generals).
    s = jnp.einsum("nqd,nkd->nqk", qh.astype(jnp.bfloat16), kh.astype(jnp.bfloat16),
                   preferred_element_type=jnp.float32) + bias              # (NH, S, S)
    s = s - jnp.max(s, axis=-1, keepdims=True)
    p = jnp.exp(s)
    denom = jnp.sum(p, axis=-1, keepdims=True)                             # (NH, S, 1), >= 1
    ctx = jnp.einsum("nqk,nkd->nqd", p.astype(jnp.bfloat16), vh.astype(jnp.bfloat16),
                     preferred_element_type=jnp.float32) / denom           # exact softmax normalize
    ctx = _merge_heads(ctx)                                                # (TS, H)

    attn = jnp.dot(ctx.astype(jnp.bfloat16), wo_ref[0],
                   preferred_element_type=jnp.float32) + bo_ref[0]
    x1 = _layer_norm(x + attn, ln1g_ref[0], ln1b_ref[0])

    # ---- FFN ----
    hmid = _gelu(jnp.dot(x1.astype(jnp.bfloat16), w1_ref[0],
                         preferred_element_type=jnp.float32) + b1_ref[0])
    ffn = jnp.dot(hmid.astype(jnp.bfloat16), w2_ref[0],
                  preferred_element_type=jnp.float32) + b2_ref[0]
    x2 = _layer_norm(x1 + ffn, ln2g_ref[0], ln2b_ref[0])

    x_sc[...] = x2

    # Only after the last layer does the CLS hidden state leave VMEM.
    @pl.when(l == pl.num_programs(1) - 1)
    def _():
        o_ref[...] = x2[0:1, :].reshape(1, 1, H)


# ------------------------------ pallas wrapper --------------------------------
def dpr_encoder_forward(params, input_ids, attention_mask, token_type_ids, position_ids):
    # The PyTorch wrapper accepts position_ids but does NOT forward it to the model; the underlying
    # BERT embeddings then use default arange positions.  Reproduce that.
    del position_ids
    pos = jnp.arange(S, dtype=jnp.int32)[None, :]
    emb = (params["word_emb"][input_ids]
           + params["pos_emb"][pos]
           + params["type_emb"][token_type_ids]).astype(jnp.float32)       # (B, S, H)
    emb2d = emb.reshape(B * S, H)                                          # 2D residual layout

    # Additive key-padding bias at its natural size; broadcast over heads/queries in-kernel.
    bias = ((1.0 - attention_mask.astype(jnp.float32)) * NEG)[:, None, :]  # (B, 1, S)

    def layer_spec(a):
        nd = a.ndim
        return pl.BlockSpec((1,) + a.shape[1:], lambda b, l: (l,) + (0,) * (nd - 1))

    in_specs = [
        pl.BlockSpec((TS, H), lambda b, l: (b, 0)),                        # emb tokens, per batch tile
        pl.BlockSpec((TB, 1, S), lambda b, l: (b, 0, 0)),                  # attention bias, per tile
        pl.BlockSpec((1, H), lambda b, l: (0, 0),
                     pipeline_mode=pl.Buffered(1)),                        # emb LN gamma (grid-const)
        pl.BlockSpec((1, H), lambda b, l: (0, 0),
                     pipeline_mode=pl.Buffered(1)),                        # emb LN beta  (grid-const)
    ] + [layer_spec(params[k]) for k in LAYER_KEYS]

    out = pl.pallas_call(
        dpr_fused_kernel,
        out_shape=jax.ShapeDtypeStruct((B, 1, H), jnp.float32),
        grid=(B // TB, L),
        in_specs=in_specs,
        out_specs=pl.BlockSpec((TB, 1, H), lambda b, l: (b, 0, 0)),
        scratch_shapes=[pltpu.VMEM((TS, H), jnp.float32)],
        compiler_params=pltpu.CompilerParams(
            dimension_semantics=("parallel", "arbitrary")),
        # TODO(synk): at real DPR sizes (H=768, S=512, L=12) set vmem_limit_bytes explicitly and tile
        # the sequence / QKV(3H) / FFN(I) dims in 128/256 multiples against the per-generation VMEM
        # budget (16/32 MiB defaults; 64 MiB total on v7x) instead of full-extent blocks.
    )(emb2d, bias, params["emb_ln_g"], params["emb_ln_b"],
      *(params[k] for k in LAYER_KEYS))

    return out[:, 0, :]    # (B, H) pooled CLS output


# ------------------------------ parameter init --------------------------------
def init_params(key):
    def normal(k, shape, scale=0.02):
        return scale * jax.random.normal(k, shape, dtype=jnp.float32)

    keys = jax.random.split(key, 5 + L)
    params = {
        "word_emb": normal(keys[0], (VOCAB, H)),
        "pos_emb": normal(keys[1], (MAXPOS, H)),
        "type_emb": normal(keys[2], (NTYPES, H)),
        "emb_ln_g": 1.0 + normal(keys[3], (1, H)),
        "emb_ln_b": normal(keys[4], (1, H)),
    }
    per_layer = {k: [] for k in LAYER_KEYS}
    for layer in range(L):
        lk = jax.random.split(keys[5 + layer], 12)
        wq, wk, wv = normal(lk[0], (H, H)), normal(lk[2], (H, H)), normal(lk[4], (H, H))
        bq, bk, bv = normal(lk[1], (1, H)), normal(lk[3], (1, H)), normal(lk[5], (1, H))
        # Fold the 1/sqrt(HD) attention scale into the Q projection (weights AND bias).
        per_layer["wqkv"].append(jnp.concatenate([wq * SCALE, wk, wv], axis=1))   # (H, 3H)
        per_layer["bqkv"].append(jnp.concatenate([bq * SCALE, bk, bv], axis=1))   # (1, 3H)
        per_layer["wo"].append(normal(lk[6], (H, H)))
        per_layer["bo"].append(normal(lk[7], (1, H)))
        per_layer["ln1g"].append(jnp.ones((1, H), jnp.float32))
        per_layer["ln1b"].append(jnp.zeros((1, H), jnp.float32))
        per_layer["w1"].append(normal(lk[8], (H, I)))
        per_layer["b1"].append(normal(lk[9], (1, I)))
        per_layer["w2"].append(normal(lk[10], (I, H)))
        per_layer["b2"].append(normal(lk[11], (1, H)))
        per_layer["ln2g"].append(jnp.ones((1, H), jnp.float32))
        per_layer["ln2b"].append(jnp.zeros((1, H), jnp.float32))

    mxu_bf16 = {"wqkv", "wo", "w1", "w2"}   # big matrices: bf16 MXU feed + halved HBM/VMEM traffic
    for k, vlist in per_layer.items():
        stacked = jnp.stack(vlist, axis=0)
        params[k] = stacked.astype(jnp.bfloat16) if k in mxu_bf16 else stacked
    return params


# ----------------------------------- main --------------------------------------
if __name__ == "__main__":
    key = jax.random.PRNGKey(0)
    pkey, ikey = jax.random.split(key)
    params = init_params(pkey)

    input_ids = jax.random.randint(ikey, (B, S), 0, VOCAB, dtype=jnp.int32)
    attention_mask = jnp.array([[1] * S, [1] * (S - 2) + [0, 0]], dtype=jnp.int32)
    token_type_ids = jnp.zeros((B, S), dtype=jnp.int32)
    position_ids = jnp.tile(jnp.arange(S, dtype=jnp.int32)[None, :], (B, 1))

    out = dpr_encoder_forward(params, input_ids, attention_mask, token_type_ids, position_ids)
    out = jax.block_until_ready(out)

    assert out.shape == (B, H), out.shape
    assert bool(jnp.all(jnp.isfinite(out)))
    print("KERNEL_OK")
</pallas_src>

<mosaic_0001>
module attributes {stable_mosaic.version = 11 : i64} {
  func.func @dpr_fused_kernel(%arg0: i32, %arg1: i32, %arg2: memref<8x32xf32, #tpu.memory_space<vmem>>, %arg3: memref<1x1x8xf32, #tpu.memory_space<vmem>>, %arg4: memref<1x32xf32, #tpu.memory_space<vmem>>, %arg5: memref<1x32xf32, #tpu.memory_space<vmem>>, %arg6: memref<1x32x96xbf16, #tpu.memory_space<vmem>>, %arg7: memref<1x1x96xf32, #tpu.memory_space<vmem>>, %arg8: memref<1x32x32xbf16, #tpu.memory_space<vmem>>, %arg9: memref<1x1x32xf32, #tpu.memory_space<vmem>>, %arg10: memref<1x1x32xf32, #tpu.memory_space<vmem>>, %arg11: memref<1x1x32xf32, #tpu.memory_space<vmem>>, %arg12: memref<1x32x64xbf16, #tpu.memory_space<vmem>>, %arg13: memref<1x1x64xf32, #tpu.memory_space<vmem>>, %arg14: memref<1x64x32xbf16, #tpu.memory_space<vmem>>, %arg15: memref<1x1x32xf32, #tpu.memory_space<vmem>>, %arg16: memref<1x1x32xf32, #tpu.memory_space<vmem>>, %arg17: memref<1x1x32xf32, #tpu.memory_space<vmem>>, %arg18: memref<1x1x32xf32, #tpu.memory_space<vmem>>, %arg19: memref<8x32xf32, #tpu.memory_space<vmem>>) attributes {dimension_semantics = [#tpu.dimension_semantics<parallel>, #tpu.dimension_semantics<arbitrary>], iteration_bounds = array<i64: 2, 2>, scalar_prefetch = 0 : i64, scratch_operands = 1 : i64, tpu.core_type = #tpu.core_type<tc>, window_params = [{transform_indices = @transform_0, window_bounds = array<i64: 8, 32>}, {transform_indices = @transform_1, window_bounds = array<i64: 1, 1, 8>}, {pipeline_mode = #tpu.pipeline_mode<synchronous>, transform_indices = @transform_2, window_bounds = array<i64: 1, 32>}, {pipeline_mode = #tpu.pipeline_mode<synchronous>, transform_indices = @transform_3, window_bounds = array<i64: 1, 32>}, {transform_indices = @transform_4, window_bounds = array<i64: 1, 32, 96>}, {transform_indices = @transform_5, window_bounds = array<i64: 1, 1, 96>}, {transform_indices = @transform_6, window_bounds = array<i64: 1, 32, 32>}, {transform_indices = @transform_7, window_bounds = array<i64: 1, 1, 32>}, {transform_indices = @transform_8, window_bounds = array<i64: 1, 1, 32>}, {transform_indices = @transform_9, window_bounds = array<i64: 1, 1, 32>}, {transform_indices = @transform_10, window_bounds = array<i64: 1, 32, 64>}, {transform_indices = @transform_11, window_bounds = array<i64: 1, 1, 64>}, {transform_indices = @transform_12, window_bounds = array<i64: 1, 64, 32>}, {transform_indices = @transform_13, window_bounds = array<i64: 1, 1, 32>}, {transform_indices = @transform_14, window_bounds = array<i64: 1, 1, 32>}, {transform_indices = @transform_15, window_bounds = array<i64: 1, 1, 32>}, {transform_indices = @transform_16, window_bounds = array<i64: 1, 1, 32>}]} {
    %c0_i32 = arith.constant 0 : i32
    %0 = arith.cmpi eq, %arg1, %c0_i32 : i32
    %1 = arith.extui %0 : i1 to i32
    %c0_i32_0 = arith.constant 0 : i32
    %2 = arith.cmpi ne, %1, %c0_i32_0 : i32
    scf.if %2 {
      %c0_65 = arith.constant 0 : index
      %c0_66 = arith.constant 0 : index
      %164 = vector.load %arg2[%c0_65, %c0_66] : memref<8x32xf32, #tpu.memory_space<vmem>>, vector<8x32xf32>
      %c0_67 = arith.constant 0 : index
      %c0_68 = arith.constant 0 : index
      %165 = vector.load %arg4[%c0_67, %c0_68] : memref<1x32xf32, #tpu.memory_space<vmem>>, vector<1x32xf32>
      %c0_69 = arith.constant 0 : index
      %c0_70 = arith.constant 0 : index
      %166 = vector.load %arg5[%c0_69, %c0_70] : memref<1x32xf32, #tpu.memory_space<vmem>>, vector<1x32xf32>
      %cst_71 = arith.constant dense<0.000000e+00> : vector<8xf32>
      %167 = vector.multi_reduction <add>, %164, %cst_71 [1] : vector<8x32xf32> to vector<8xf32>
      %168 = vector.shape_cast %167 : vector<8xf32> to vector<8x1xf32>
      %cst_72 = arith.constant 3.200000e+01 : f32
      %169 = vector.broadcast %cst_72 : f32 to vector<8x1xf32>
      %170 = arith.divf %168, %169 : vector<8x1xf32>
      %171 = vector.broadcast %170 : vector<8x1xf32> to vector<8x32xf32>
      %172 = arith.subf %164, %171 : vector<8x32xf32>
      %173 = arith.mulf %172, %172 : vector<8x32xf32>
      %cst_73 = arith.constant dense<0.000000e+00> : vector<8xf32>
      %174 = vector.multi_reduction <add>, %173, %cst_73 [1] : vector<8x32xf32> to vector<8xf32>
      %175 = vector.shape_cast %174 : vector<8xf32> to vector<8x1xf32>
      %cst_74 = arith.constant 3.200000e+01 : f32
      %176 = vector.broadcast %cst_74 : f32 to vector<8x1xf32>
      %177 = arith.divf %175, %176 : vector<8x1xf32>
      %178 = vector.broadcast %170 : vector<8x1xf32> to vector<8x32xf32>
      %179 = arith.subf %164, %178 : vector<8x32xf32>
      %cst_75 = arith.constant 9.99999996E-13 : f32
      %180 = vector.broadcast %cst_75 : f32 to vector<8x1xf32>
      %181 = arith.addf %177, %180 : vector<8x1xf32>
      %182 = math.rsqrt %181 : vector<8x1xf32>
      %183 = vector.broadcast %182 : vector<8x1xf32> to vector<8x32xf32>
      %184 = arith.mulf %179, %183 : vector<8x32xf32>
      %185 = vector.broadcast %165 : vector<1x32xf32> to vector<8x32xf32>
      %186 = arith.mulf %184, %185 : vector<8x32xf32>
      %187 = vector.broadcast %166 : vector<1x32xf32> to vector<8x32xf32>
      %188 = arith.addf %186, %187 : vector<8x32xf32>
      %c0_76 = arith.constant 0 : index
      %c0_77 = arith.constant 0 : index
      %189 = vector.load %arg19[%c0_76, %c0_77] : memref<8x32xf32, #tpu.memory_space<vmem>>, vector<8x32xf32>
      tpu.vector_store %arg19[%c0_76, %c0_77], %188 {strides = array<i32>} : memref<8x32xf32, #tpu.memory_space<vmem>>, vector<8x32xf32>,
    } else {
    }
    %c0 = arith.constant 0 : index
    %c0_1 = arith.constant 0 : index
    %3 = vector.load %arg19[%c0, %c0_1] : memref<8x32xf32, #tpu.memory_space<vmem>>, vector<8x32xf32>
    %c0_2 = arith.constant 0 : index
    %c0_3 = arith.constant 0 : index
    %c0_4 = arith.constant 0 : index
    %4 = vector.load %arg3[%c0_2, %c0_3, %c0_4] : memref<1x1x8xf32, #tpu.memory_space<vmem>>, vector<1x1x8xf32>
    %5 = arith.truncf %3 : vector<8x32xf32> to vector<8x32xbf16>
    %c0_5 = arith.constant 0 : index
    %c0_6 = arith.constant 0 : index
    %c0_7 = arith.constant 0 : index
    %6 = vector.load %arg6[%c0_5, %c0_6, %c0_7] : memref<1x32x96xbf16, #tpu.memory_space<vmem>>, vector<1x32x96xbf16>
    %7 = vector.shape_cast %6 : vector<1x32x96xbf16> to vector<32x96xbf16>
    %cst = arith.constant dense<0.000000e+00> : vector<8x96xf32>
    %8 = tpu.matmul %5, %7, %cst {dimension_numbers = #tpu.dot_dimension_numbers<[1], [0], [0], [1], [0, 0, 1, 1], [], []>} : vector<8x32xbf16>, vector<32x96xbf16>, vector<8x96xf32> -> vector<8x96xf32>
    %c0_8 = arith.constant 0 : index
    %c0_9 = arith.constant 0 : index
    %c0_10 = arith.constant 0 : index
    %9 = vector.load %arg7[%c0_8, %c0_9, %c0_10] : memref<1x1x96xf32, #tpu.memory_space<vmem>>, vector<1x1x96xf32>
    %10 = vector.shape_cast %9 : vector<1x1x96xf32> to vector<1x96xf32>
    %11 = vector.broadcast %10 : vector<1x96xf32> to vector<8x96xf32>
    %12 = arith.addf %8, %11 : vector<8x96xf32>
    %13 = vector.extract_strided_slice %12 {offsets = [0, 0], sizes = [8, 32], strides = [1, 1]} : vector<8x96xf32> to vector<8x32xf32>
    %14 = vector.extract_strided_slice %13 {offsets = [0, 0], sizes = [8, 8], strides = [1, 1]} : vector<8x32xf32> to vector<8x8xf32>
    %15 = vector.extract_strided_slice %13 {offsets = [0, 8], sizes = [8, 8], strides = [1, 1]} : vector<8x32xf32> to vector<8x8xf32>
    %16 = vector.extract_strided_slice %13 {offsets = [0, 16], sizes = [8, 8], strides = [1, 1]} : vector<8x32xf32> to vector<8x8xf32>
    %17 = vector.extract_strided_slice %13 {offsets = [0, 24], sizes = [8, 8], strides = [1, 1]} : vector<8x32xf32> to vector<8x8xf32>
    %18 = vector.shape_cast %14 : vector<8x8xf32> to vector<1x8x8xf32>
    %19 = vector.shape_cast %15 : vector<8x8xf32> to vector<1x8x8xf32>
    %20 = vector.shape_cast %16 : vector<8x8xf32> to vector<1x8x8xf32>
    %21 = vector.shape_cast %17 : vector<8x8xf32> to vector<1x8x8xf32>
    %22 = tpu.concatenate %18, %19, %20, %21 in 0 : vector<1x8x8xf32>, vector<1x8x8xf32>, vector<1x8x8xf32>, vector<1x8x8xf32> -> vector<4x8x8xf32>
    %23 = vector.extract_strided_slice %12 {offsets = [0, 32], sizes = [8, 32], strides = [1, 1]} : vector<8x96xf32> to vector<8x32xf32>
    %24 = vector.extract_strided_slice %23 {offsets = [0, 0], sizes = [8, 8], strides = [1, 1]} : vector<8x32xf32> to vector<8x8xf32>
    %25 = vector.extract_strided_slice %23 {offsets = [0, 8], sizes = [8, 8], strides = [1, 1]} : vector<8x32xf32> to vector<8x8xf32>
    %26 = vector.extract_strided_slice %23 {offsets = [0, 16], sizes = [8, 8], strides = [1, 1]} : vector<8x32xf32> to vector<8x8xf32>
    %27 = vector.extract_strided_slice %23 {offsets = [0, 24], sizes = [8, 8], strides = [1, 1]} : vector<8x32xf32> to vector<8x8xf32>
    %28 = vector.shape_cast %24 : vector<8x8xf32> to vector<1x8x8xf32>
    %29 = vector.shape_cast %25 : vector<8x8xf32> to vector<1x8x8xf32>
    %30 = vector.shape_cast %26 : vector<8x8xf32> to vector<1x8x8xf32>
    %31 = vector.shape_cast %27 : vector<8x8xf32> to vector<1x8x8xf32>
    %32 = tpu.concatenate %28, %29, %30, %31 in 0 : vector<1x8x8xf32>, vector<1x8x8xf32>, vector<1x8x8xf32>, vector<1x8x8xf32> -> vector<4x8x8xf32>
    %33 = vector.extract_strided_slice %12 {offsets = [0, 64], sizes = [8, 32], strides = [1, 1]} : vector<8x96xf32> to vector<8x32xf32>
    %34 = vector.extract_strided_slice %33 {offsets = [0, 0], sizes = [8, 8], strides = [1, 1]} : vector<8x32xf32> to vector<8x8xf32>
    %35 = vector.extract_strided_slice %33 {offsets = [0, 8], sizes = [8, 8], strides = [1, 1]} : vector<8x32xf32> to vector<8x8xf32>
    %36 = vector.extract_strided_slice %33 {offsets = [0, 16], sizes = [8, 8], strides = [1, 1]} : vector<8x32xf32> to vector<8x8xf32>
    %37 = vector.extract_strided_slice %33 {offsets = [0, 24], sizes = [8, 8], strides = [1, 1]} : vector<8x32xf32> to vector<8x8xf32>
    %38 = vector.shape_cast %34 : vector<8x8xf32> to vector<1x8x8xf32>
    %39 = vector.shape_cast %35 : vector<8x8xf32> to vector<1x8x8xf32>
    %40 = vector.shape_cast %36 : vector<8x8xf32> to vector<1x8x8xf32>
    %41 = vector.shape_cast %37 : vector<8x8xf32> to vector<1x8x8xf32>
    %42 = tpu.concatenate %38, %39, %40, %41 in 0 : vector<1x8x8xf32>, vector<1x8x8xf32>, vector<1x8x8xf32>, vector<1x8x8xf32> -> vector<4x8x8xf32>
    %43 = arith.truncf %22 : vector<4x8x8xf32> to vector<4x8x8xbf16>
    %44 = arith.truncf %32 : vector<4x8x8xf32> to vector<4x8x8xbf16>
    "tpu.trace_start"() <{level = 10 : i32, message = "nqd,nkd->nqk"}> : () -> ()
    %cst_11 = arith.constant dense<0.000000e+00> : vector<4x8x8xf32>
    %45 = tpu.matmul %43, %44, %cst_11 {dimension_numbers = #tpu.dot_dimension_numbers<[2], [2], [1], [1], [0, 0, 0, 1, 1, 1], [0], [0]>} : vector<4x8x8xbf16>, vector<4x8x8xbf16>, vector<4x8x8xf32> -> vector<4x8x8xf32>
    "tpu.trace_stop"() : () -> ()
    %46 = vector.broadcast %4 : vector<1x1x8xf32> to vector<4x8x8xf32>
    %47 = arith.addf %45, %46 : vector<4x8x8xf32>
    %cst_12 = arith.constant dense<0xFF800000> : vector<4x8xf32>
    %48 = vector.multi_reduction <maximumf>, %47, %cst_12 [2] : vector<4x8x8xf32> to vector<4x8xf32>
    %49 = vector.shape_cast %48 : vector<4x8xf32> to vector<4x8x1xf32>
    %50 = vector.broadcast %49 : vector<4x8x1xf32> to vector<4x8x8xf32>
    %51 = arith.subf %47, %50 : vector<4x8x8xf32>
    %52 = math.exp %51 : vector<4x8x8xf32>
    %cst_13 = arith.constant dense<0.000000e+00> : vector<4x8xf32>
    %53 = vector.multi_reduction <add>, %52, %cst_13 [2] : vector<4x8x8xf32> to vector<4x8xf32>
    %54 = vector.shape_cast %53 : vector<4x8xf32> to vector<4x8x1xf32>
    %55 = arith.truncf %52 : vector<4x8x8xf32> to vector<4x8x8xbf16>
    %56 = arith.truncf %42 : vector<4x8x8xf32> to vector<4x8x8xbf16>
    "tpu.trace_start"() <{level = 10 : i32, message = "nqk,nkd->nqd"}> : () -> ()
    %cst_14 = arith.constant dense<0.000000e+00> : vector<4x8x8xf32>
    %57 = tpu.matmul %55, %56, %cst_14 {dimension_numbers = #tpu.dot_dimension_numbers<[2], [1], [1], [2], [0, 0, 0, 1, 1, 2], [0], [0]>} : vector<4x8x8xbf16>, vector<4x8x8xbf16>, vector<4x8x8xf32> -> vector<4x8x8xf32>
    "tpu.trace_stop"() : () -> ()
    %58 = vector.broadcast %54 : vector<4x8x1xf32> to vector<4x8x8xf32>
    %59 = arith.divf %57, %58 : vector<4x8x8xf32>
    %60 = vector.extract_strided_slice %59 {offsets = [0, 0, 0], sizes = [1, 8, 8], strides = [1, 1, 1]} : vector<4x8x8xf32> to vector<1x8x8xf32>
    %61 = vector.shape_cast %60 : vector<1x8x8xf32> to vector<8x8xf32>
    %62 = vector.extract_strided_slice %59 {offsets = [1, 0, 0], sizes = [1, 8, 8], strides = [1, 1, 1]} : vector<4x8x8xf32> to vector<1x8x8xf32>
    %63 = vector.shape_cast %62 : vector<1x8x8xf32> to vector<8x8xf32>
    %64 = vector.extract_strided_slice %59 {offsets = [2, 0, 0], sizes = [1, 8, 8], strides = [1, 1, 1]} : vector<4x8x8xf32> to vector<1x8x8xf32>
    %65 = vector.shape_cast %64 : vector<1x8x8xf32> to vector<8x8xf32>
    %66 = vector.extract_strided_slice %59 {offsets = [3, 0, 0], sizes = [1, 8, 8], strides = [1, 1, 1]} : vector<4x8x8xf32> to vector<1x8x8xf32>
    %67 = vector.shape_cast %66 : vector<1x8x8xf32> to vector<8x8xf32>
    %68 = tpu.concatenate %61, %63, %65, %67 in 1 : vector<8x8xf32>, vector<8x8xf32>, vector<8x8xf32>, vector<8x8xf32> -> vector<8x32xf32>
    %69 = arith.truncf %68 : vector<8x32xf32> to vector<8x32xbf16>
    %c0_15 = arith.constant 0 : index
    %c0_16 = arith.constant 0 : index
    %c0_17 = arith.constant 0 : index
    %70 = vector.load %arg8[%c0_15, %c0_16, %c0_17] : memref<1x32x32xbf16, #tpu.memory_space<vmem>>, vector<1x32x32xbf16>
    %71 = vector.shape_cast %70 : vector<1x32x32xbf16> to vector<32x32xbf16>
    %cst_18 = arith.constant dense<0.000000e+00> : vector<8x32xf32>
    %72 = tpu.matmul %69, %71, %cst_18 {dimension_numbers = #tpu.dot_dimension_numbers<[1], [0], [0], [1], [0, 0, 1, 1], [], []>} : vector<8x32xbf16>, vector<32x32xbf16>, vector<8x32xf32> -> vector<8x32xf32>
    %c0_19 = arith.constant 0 : index
    %c0_20 = arith.constant 0 : index
    %c0_21 = arith.constant 0 : index
    %73 = vector.load %arg9[%c0_19, %c0_20, %c0_21] : memref<1x1x32xf32, #tpu.memory_space<vmem>>, vector<1x1x32xf32>
    %74 = vector.shape_cast %73 : vector<1x1x32xf32> to vector<1x32xf32>
    %75 = vector.broadcast %74 : vector<1x32xf32> to vector<8x32xf32>
    %76 = arith.addf %72, %75 : vector<8x32xf32>
    %77 = arith.addf %3, %76 : vector<8x32xf32>
    %c0_22 = arith.constant 0 : index
    %c0_23 = arith.constant 0 : index
    %c0_24 = arith.constant 0 : index
    %78 = vector.load %arg10[%c0_22, %c0_23, %c0_24] : memref<1x1x32xf32, #tpu.memory_space<vmem>>, vector<1x1x32xf32>
    %79 = vector.shape_cast %78 : vector<1x1x32xf32> to vector<1x32xf32>
    %c0_25 = arith.constant 0 : index
    %c0_26 = arith.constant 0 : index
    %c0_27 = arith.constant 0 : index
    %80 = vector.load %arg11[%c0_25, %c0_26, %c0_27] : memref<1x1x32xf32, #tpu.memory_space<vmem>>, vector<1x1x32xf32>
    %81 = vector.shape_cast %80 : vector<1x1x32xf32> to vector<1x32xf32>
    %cst_28 = arith.constant dense<0.000000e+00> : vector<8xf32>
    %82 = vector.multi_reduction <add>, %77, %cst_28 [1] : vector<8x32xf32> to vector<8xf32>
    %83 = vector.shape_cast %82 : vector<8xf32> to vector<8x1xf32>
    %cst_29 = arith.constant 3.200000e+01 : f32
    %84 = vector.broadcast %cst_29 : f32 to vector<8x1xf32>
    %85 = arith.divf %83, %84 : vector<8x1xf32>
    %86 = vector.broadcast %85 : vector<8x1xf32> to vector<8x32xf32>
    %87 = arith.subf %77, %86 : vector<8x32xf32>
    %88 = arith.mulf %87, %87 : vector<8x32xf32>
    %cst_30 = arith.constant dense<0.000000e+00> : vector<8xf32>
    %89 = vector.multi_reduction <add>, %88, %cst_30 [1] : vector<8x32xf32> to vector<8xf32>
    %90 = vector.shape_cast %89 : vector<8xf32> to vector<8x1xf32>
    %cst_31 = arith.constant 3.200000e+01 : f32
    %91 = vector.broadcast %cst_31 : f32 to vector<8x1xf32>
    %92 = arith.divf %90, %91 : vector<8x1xf32>
    %93 = vector.broadcast %85 : vector<8x1xf32> to vector<8x32xf32>
    %94 = arith.subf %77, %93 : vector<8x32xf32>
    %cst_32 = arith.constant 9.99999996E-13 : f32
    %95 = vector.broadcast %cst_32 : f32 to vector<8x1xf32>
    %96 = arith.addf %92, %95 : vector<8x1xf32>
    %97 = math.rsqrt %96 : vector<8x1xf32>
    %98 = vector.broadcast %97 : vector<8x1xf32> to vector<8x32xf32>
    %99 = arith.mulf %94, %98 : vector<8x32xf32>
    %100 = vector.broadcast %79 : vector<1x32xf32> to vector<8x32xf32>
    %101 = arith.mulf %99, %100 : vector<8x32xf32>
    %102 = vector.broadcast %81 : vector<1x32xf32> to vector<8x32xf32>
    %103 = arith.addf %101, %102 : vector<8x32xf32>
    %104 = arith.truncf %103 : vector<8x32xf32> to vector<8x32xbf16>
    %c0_33 = arith.constant 0 : index
    %c0_34 = arith.constant 0 : index
    %c0_35 = arith.constant 0 : index
    %105 = vector.load %arg12[%c0_33, %c0_34, %c0_35] : memref<1x32x64xbf16, #tpu.memory_space<vmem>>, vector<1x32x64xbf16>
    %106 = vector.shape_cast %105 : vector<1x32x64xbf16> to vector<32x64xbf16>
    %cst_36 = arith.constant dense<0.000000e+00> : vector<8x64xf32>
    %107 = tpu.matmul %104, %106, %cst_36 {dimension_numbers = #tpu.dot_dimension_numbers<[1], [0], [0], [1], [0, 0, 1, 1], [], []>} : vector<8x32xbf16>, vector<32x64xbf16>, vector<8x64xf32> -> vector<8x64xf32>
    %c0_37 = arith.constant 0 : index
    %c0_38 = arith.constant 0 : index
    %c0_39 = arith.constant 0 : index
    %108 = vector.load %arg13[%c0_37, %c0_38, %c0_39] : memref<1x1x64xf32, #tpu.memory_space<vmem>>, vector<1x1x64xf32>
    %109 = vector.shape_cast %108 : vector<1x1x64xf32> to vector<1x64xf32>
    %110 = vector.broadcast %109 : vector<1x64xf32> to vector<8x64xf32>
    %111 = arith.addf %107, %110 : vector<8x64xf32>
    %cst_40 = arith.constant 5.000000e-01 : f32
    %112 = vector.broadcast %cst_40 : f32 to vector<8x64xf32>
    %113 = arith.mulf %112, %111 : vector<8x64xf32>
    %cst_41 = arith.constant 4.471500e-02 : f32
    %114 = vector.broadcast %cst_41 : f32 to vector<8x64xf32>
    %115 = arith.mulf %114, %111 : vector<8x64xf32>
    %116 = arith.mulf %115, %111 : vector<8x64xf32>
    %117 = arith.mulf %116, %111 : vector<8x64xf32>
    %118 = arith.addf %111, %117 : vector<8x64xf32>
    %cst_42 = arith.constant 0.797884583 : f32
    %119 = vector.broadcast %cst_42 : f32 to vector<8x64xf32>
    %120 = arith.mulf %119, %118 : vector<8x64xf32>
    %121 = math.tanh %120 : vector<8x64xf32>
    %cst_43 = arith.constant 1.000000e+00 : f32
    %122 = vector.broadcast %cst_43 : f32 to vector<8x64xf32>
    %123 = arith.addf %122, %121 : vector<8x64xf32>
    %124 = arith.mulf %113, %123 : vector<8x64xf32>
    %125 = arith.truncf %124 : vector<8x64xf32> to vector<8x64xbf16>
    %c0_44 = arith.constant 0 : index
    %c0_45 = arith.constant 0 : index
    %c0_46 = arith.constant 0 : index
    %126 = vector.load %arg14[%c0_44, %c0_45, %c0_46] : memref<1x64x32xbf16, #tpu.memory_space<vmem>>, vector<1x64x32xbf16>
    %127 = vector.shape_cast %126 : vector<1x64x32xbf16> to vector<64x32xbf16>
    %cst_47 = arith.constant dense<0.000000e+00> : vector<8x32xf32>
    %128 = tpu.matmul %125, %127, %cst_47 {dimension_numbers = #tpu.dot_dimension_numbers<[1], [0], [0], [1], [0, 0, 1, 1], [], []>} : vector<8x64xbf16>, vector<64x32xbf16>, vector<8x32xf32> -> vector<8x32xf32>
    %c0_48 = arith.constant 0 : index
    %c0_49 = arith.constant 0 : index
    %c0_50 = arith.constant 0 : index
    %129 = vector.load %arg15[%c0_48, %c0_49, %c0_50] : memref<1x1x32xf32, #tpu.memory_space<vmem>>, vector<1x1x32xf32>
    %130 = vector.shape_cast %129 : vector<1x1x32xf32> to vector<1x32xf32>
    %131 = vector.broadcast %130 : vector<1x32xf32> to vector<8x32xf32>
    %132 = arith.addf %128, %131 : vector<8x32xf32>
    %133 = arith.addf %103, %132 : vector<8x32xf32>
    %c0_51 = arith.constant 0 : index
    %c0_52 = arith.constant 0 : index
    %c0_53 = arith.constant 0 : index
    %134 = vector.load %arg16[%c0_51, %c0_52, %c0_53] : memref<1x1x32xf32, #tpu.memory_space<vmem>>, vector<1x1x32xf32>
    %135 = vector.shape_cast %134 : vector<1x1x32xf32> to vector<1x32xf32>
    %c0_54 = arith.constant 0 : index
    %c0_55 = arith.constant 0 : index
    %c0_56 = arith.constant 0 : index
    %136 = vector.load %arg17[%c0_54, %c0_55, %c0_56] : memref<1x1x32xf32, #tpu.memory_space<vmem>>, vector<1x1x32xf32>
    %137 = vector.shape_cast %136 : vector<1x1x32xf32> to vector<1x32xf32>
    %cst_57 = arith.constant dense<0.000000e+00> : vector<8xf32>
    %138 = vector.multi_reduction <add>, %133, %cst_57 [1] : vector<8x32xf32> to vector<8xf32>
    %139 = vector.shape_cast %138 : vector<8xf32> to vector<8x1xf32>
    %cst_58 = arith.constant 3.200000e+01 : f32
    %140 = vector.broadcast %cst_58 : f32 to vector<8x1xf32>
    %141 = arith.divf %139, %140 : vector<8x1xf32>
    %142 = vector.broadcast %141 : vector<8x1xf32> to vector<8x32xf32>
    %143 = arith.subf %133, %142 : vector<8x32xf32>
    %144 = arith.mulf %143, %143 : vector<8x32xf32>
    %cst_59 = arith.constant dense<0.000000e+00> : vector<8xf32>
    %145 = vector.multi_reduction <add>, %144, %cst_59 [1] : vector<8x32xf32> to vector<8xf32>
    %146 = vector.shape_cast %145 : vector<8xf32> to vector<8x1xf32>
    %cst_60 = arith.constant 3.200000e+01 : f32
    %147 = vector.broadcast %cst_60 : f32 to vector<8x1xf32>
    %148 = arith.divf %146, %147 : vector<8x1xf32>
    %149 = vector.broadcast %141 : vector<8x1xf32> to vector<8x32xf32>
    %150 = arith.subf %133, %149 : vector<8x32xf32>
    %cst_61 = arith.constant 9.99999996E-13 : f32
    %151 = vector.broadcast %cst_61 : f32 to vector<8x1xf32>
    %152 = arith.addf %148, %151 : vector<8x1xf32>
    %153 = math.rsqrt %152 : vector<8x1xf32>
    %154 = vector.broadcast %153 : vector<8x1xf32> to vector<8x32xf32>
    %155 = arith.mulf %150, %154 : vector<8x32xf32>
    %156 = vector.broadcast %135 : vector<1x32xf32> to vector<8x32xf32>
    %157 = arith.mulf %155, %156 : vector<8x32xf32>
    %158 = vector.broadcast %137 : vector<1x32xf32> to vector<8x32xf32>
    %159 = arith.addf %157, %158 : vector<8x32xf32>
    %c0_62 = arith.constant 0 : index
    %c0_63 = arith.constant 0 : index
    %160 = vector.load %arg19[%c0_62, %c0_63] : memref<8x32xf32, #tpu.memory_space<vmem>>, vector<8x32xf32>
    tpu.vector_store %arg19[%c0_62, %c0_63], %159 {strides = array<i32>} : memref<8x32xf32, #tpu.memory_space<vmem>>, vector<8x32xf32>,
    %c1_i32 = arith.constant 1 : i32
    %161 = arith.cmpi eq, %arg1, %c1_i32 : i32
    %162 = arith.extui %161 : i1 to i32
    %c0_i32_64 = arith.constant 0 : i32
    %163 = arith.cmpi ne, %162, %c0_i32_64 : i32
    scf.if %163 {
      %164 = vector.extract_strided_slice %159 {offsets = [0, 0], sizes = [1, 32], strides = [1, 1]} : vector<8x32xf32> to vector<1x32xf32>
      %165 = vector.shape_cast %164 : vector<1x32xf32> to vector<1x1x32xf32>
      %c0_65 = arith.constant 0 : index
      %c0_66 = arith.constant 0 : index
      %c0_67 = arith.constant 0 : index
      %166 = vector.load %arg18[%c0_65, %c0_66, %c0_67] : memref<1x1x32xf32, #tpu.memory_space<vmem>>, vector<1x1x32xf32>
      tpu.vector_store %arg18[%c0_65, %c0_66, %c0_67], %165 {strides = array<i32>} : memref<1x1x32xf32, #tpu.memory_space<vmem>>, vector<1x1x32xf32>,
    } else {
    }
    return
  }
  func.func @transform_0(%arg0: i32, %arg1: i32) -> (i32, i32) {
    %c0_i32 = arith.constant 0 : i32
    %c0_i32_0 = arith.constant 0 : i32
    return %arg0, %c0_i32 : i32, i32
  }
  func.func @transform_1(%arg0: i32, %arg1: i32) -> (i32, i32, i32) {
    %c0_i32 = arith.constant 0 : i32
    %c0_i32_0 = arith.constant 0 : i32
    %c0_i32_1 = arith.constant 0 : i32
    return %arg0, %c0_i32, %c0_i32_0 : i32, i32, i32
  }
  func.func @transform_2(%arg0: i32, %arg1: i32) -> (i32, i32) {
    %c0_i32 = arith.constant 0 : i32
    %c0_i32_0 = arith.constant 0 : i32
    %c0_i32_1 = arith.constant 0 : i32
    return %c0_i32, %c0_i32_0 : i32, i32
  }
  func.func @transform_3(%arg0: i32, %arg1: i32) -> (i32, i32) {
    %c0_i32 = arith.constant 0 : i32
    %c0_i32_0 = arith.constant 0 : i32
    %c0_i32_1 = arith.constant 0 : i32
    return %c0_i32, %c0_i32_0 : i32, i32
  }
  func.func @transform_4(%arg0: i32, %arg1: i32) -> (i32, i32, i32) {
    %c0_i32 = arith.constant 0 : i32
    %c0_i32_0 = arith.constant 0 : i32
    %c0_i32_1 = arith.constant 0 : i32
    return %arg1, %c0_i32, %c0_i32_0 : i32, i32, i32
  }
  func.func @transform_5(%arg0: i32, %arg1: i32) -> (i32, i32, i32) {
    %c0_i32 = arith.constant 0 : i32
    %c0_i32_0 = arith.constant 0 : i32
    %c0_i32_1 = arith.constant 0 : i32
    return %arg1, %c0_i32, %c0_i32_0 : i32, i32, i32
  }
  func.func @transform_6(%arg0: i32, %arg1: i32) -> (i32, i32, i32) {
    %c0_i32 = arith.constant 0 : i32
    %c0_i32_0 = arith.constant 0 : i32
    %c0_i32_1 = arith.constant 0 : i32
    return %arg1, %c0_i32, %c0_i32_0 : i32, i32, i32
  }
  func.func @transform_7(%arg0: i32, %arg1: i32) -> (i32, i32, i32) {
    %c0_i32 = arith.constant 0 : i32
    %c0_i32_0 = arith.constant 0 : i32
    %c0_i32_1 = arith.constant 0 : i32
    return %arg1, %c0_i32, %c0_i32_0 : i32, i32, i32
  }
  func.func @transform_8(%arg0: i32, %arg1: i32) -> (i32, i32, i32) {
    %c0_i32 = arith.constant 0 : i32
    %c0_i32_0 = arith.constant 0 : i32
    %c0_i32_1 = arith.constant 0 : i32
    return %arg1, %c0_i32, %c0_i32_0 : i32, i32, i32
  }
  func.func @transform_9(%arg0: i32, %arg1: i32) -> (i32, i32, i32) {
    %c0_i32 = arith.constant 0 : i32
    %c0_i32_0 = arith.constant 0 : i32
    %c0_i32_1 = arith.constant 0 : i32
    return %arg1, %c0_i32, %c0_i32_0 : i32, i32, i32
  }
  func.func @transform_10(%arg0: i32, %arg1: i32) -> (i32, i32, i32) {
    %c0_i32 = arith.constant 0 : i32
    %c0_i32_0 = arith.constant 0 : i32
    %c0_i32_1 = arith.constant 0 : i32
    return %arg1, %c0_i32, %c0_i32_0 : i32, i32, i32
  }
  func.func @transform_11(%arg0: i32, %arg1: i32) -> (i32, i32, i32) {
    %c0_i32 = arith.constant 0 : i32
    %c0_i32_0 = arith.constant 0 : i32
    %c0_i32_1 = arith.constant 0 : i32
    return %arg1, %c0_i32, %c0_i32_0 : i32, i32, i32
  }
  func.func @transform_12(%arg0: i32, %arg1: i32) -> (i32, i32, i32) {
    %c0_i32 = arith.constant 0 : i32
    %c0_i32_0 = arith.constant 0 : i32
    %c0_i32_1 = arith.constant 0 : i32
    return %arg1, %c0_i32, %c0_i32_0 : i32, i32, i32
  }
  func.func @transform_13(%arg0: i32, %arg1: i32) -> (i32, i32, i32) {
    %c0_i32 = arith.constant 0 : i32
    %c0_i32_0 = arith.constant 0 : i32
    %c0_i32_1 = arith.constant 0 : i32
    return %arg1, %c0_i32, %c0_i32_0 : i32, i32, i32
  }
  func.func @transform_14(%arg0: i32, %arg1: i32) -> (i32, i32, i32) {
    %c0_i32 = arith.constant 0 : i32
    %c0_i32_0 = arith.constant 0 : i32
    %c0_i32_1 = arith.constant 0 : i32
    return %arg1, %c0_i32, %c0_i32_0 : i32, i32, i32
  }
  func.func @transform_15(%arg0: i32, %arg1: i32) -> (i32, i32, i32) {
    %c0_i32 = arith.constant 0 : i32
    %c0_i32_0 = arith.constant 0 : i32
    %c0_i32_1 = arith.constant 0 : i32
    return %arg1, %c0_i32, %c0_i32_0 : i32, i32, i32
  }
  func.func @transform_16(%arg0: i32, %arg1: i32) -> (i32, i32, i32) {
    %c0_i32 = arith.constant 0 : i32
    %c0_i32_0 = arith.constant 0 : i32
    %c0_i32_1 = arith.constant 0 : i32
    return %arg0, %c0_i32, %c0_i32_0 : i32, i32, i32
  }
}

</mosaic_0001>

<bundles_post_ra>
// kernel: tpu_custom_call.1
= control target key start
LH: loop header
LB: loop body
LE: loop exit
PB: predicated region body
PF: predicated region fallthrough
CT: control target
= control target key end

     0   :  { %s2891_s0 = inlined_call_operand.hbm [shape: f32[16,32], index: 0, kind: input, shape index: {}]   ;;  %s2892_s1 = inlined_call_operand.vmem [shape: f32[2,1,8], index: 1, kind: input, shape index: {}]   ;;  %s2893_s2 = inlined_call_operand.vmem [shape: f32[1,32], index: 2, kind: input, shape index: {}]   ;;  %s2894_s3 = inlined_call_operand.hbm [shape: f32[1,32], index: 3, kind: input, shape index: {}]   ;;  %s2895_s4 = inlined_call_operand.vmem [shape: bf16[2,32,96], index: 4, kind: input, shape index: {}]   ;;  %s2896_s5 = inlined_call_operand.vmem [shape: f32[2,1,96], index: 5, kind: input, shape index: {}]   ;;  %s2897_s6 = inlined_call_operand.vmem [shape: bf16[2,32,32], index: 6, kind: input, shape index: {}]   ;;  %s2898_s7 = inlined_call_operand.vmem [shape: f32[2,1,32], index: 7, kind: input, shape index: {}]   ;;  %s2899_s8 = inlined_call_operand.vmem [shape: f32[2,1,32], index: 8, kind: input, shape index: {}]   ;;  %s2900_s9 = inlined_call_operand.vmem [shape: f32[2,1,32], index: 9, kind: input, shape index: {}]   ;;  %s2901_s10 = inlined_call_operand.vmem [shape: bf16[2,32,64], index: 10, kind: input, shape index: {}]   ;;  %s2902_s11 = inlined_call_operand.vmem [shape: f32[2,1,64], index: 11, kind: input, shape index: {}]   ;;  %s2903_s12 = inlined_call_operand.vmem [shape: bf16[2,64,32], index: 12, kind: input, shape index: {}]   ;;  %s2904_s13 = inlined_call_operand.vmem [shape: f32[2,1,32], index: 13, kind: input, shape index: {}]   ;;  %s2905_s14 = inlined_call_operand.vmem [shape: f32[2,1,32], index: 14, kind: input, shape index: {}]   ;;  %s2906_s15 = inlined_call_operand.vmem [shape: f32[2,1,32], index: 15, kind: input, shape index: {}]   ;;  %s2907_s16 = inlined_call_operand.hbm [shape: f32[2,1,32], index: 16, kind: output, shape index: {}]  }
   0x1   :  { %2927 = sst [smem:[#allocation24_spill]] %s2891_s0 }
   0x2   :  { %2928 = sst [smem:[#allocation25_spill]] %s2893_s2 }
   0x3   :  { %2929 = sst [smem:[#allocation26_spill]] %s2894_s3 }
   0x4   :  { %2930 = sst [smem:[#allocation27_spill]] %s2895_s4 }
   0x5   :  { %2931 = sst [smem:[#allocation28_spill]] %s2897_s6 }
   0x6   :  { %2932 = sst [smem:[#allocation29_spill]] %s2898_s7 }
   0x7   :  { %2933 = sst [smem:[#allocation30_spill]] %s2899_s8 }
   0x8   :  { %2934 = sst [smem:[#allocation31_spill]] %s2900_s9 }
   0x9   :  { %2935 = sst [smem:[#allocation32_spill]] %s2901_s10 }
   0xa   :  { %2936 = sst [smem:[#allocation33_spill]] %s2902_s11 }
   0xb   :  { %2937 = sst [smem:[#allocation34_spill]] %s2903_s12 }
   0xc   :  { %2938 = sst [smem:[#allocation35_spill]] %s2904_s13 }
   0xd   :  { %2939 = sst [smem:[#allocation36_spill]] %s2905_s14 }
   0xe   :  { %2940 = sst [smem:[#allocation37_spill]] %s2906_s15 }
   0xf   :  { %2941 = sst [smem:[#allocation38_spill]] %s2907_s16 }
  0x10   :  { %21 = vsyncpa [#allocation4], 0 }
  0x11   :  { %23 = vsyncpa [#allocation4 + $0x1], 0 }
  0x12   :  { %24 = vsyncpa [#allocation7], 0 }
  0x13   :  { %25 = vsyncpa [#allocation5], 0 }
  0x14   :  { %27 = vsyncpa [#allocation5 + $0x1], 0  ;;  %s2441_s21 = smov 0   ;;  %s2443_s22 = smov 0  }
  0x15   :  { %s2445_s23 = smov 0   ;;  %s2447_s24 = smov 0  }
  0x16   :  { %s2449_s25 = smov 0   ;;  %s2451_s26 = smov 0  }
  0x17   :  { %s2453_s27 = smov 0   ;;  %s2455_s28 = smov 0  }
  0x18 LB: > { %2942 = sst [smem:[#allocation12_spill]] %s2313_s21  ;;  %s1874_s29 = sadd.s32 4294967295, %s2341_s28   ;;  %s2341_s28 = sphi %s2455_s28, %s33_s28   ;;  %s2337_s27 = sphi %s2453_s27, %s3005_s27   ;;  %s2333_s26 = sphi %s2451_s26, %s3004_s26   ;;  %s2329_s25 = sphi %s2449_s25, %s3003_s25   ;;  %s2325_s24 = sphi %s2447_s24, %s3002_s24   ;;  %s2321_s23 = sphi %s2445_s23, %s3001_s23   ;;  %s2317_s22 = sphi %s2443_s22, %s3000_s22   ;;  %s2313_s21 = sphi %s2441_s21, %s2999_s21  }
  0x19   : > { %2943 = sst [smem:[#allocation13_spill]] %s2317_s22  ;;  %s1875_s30 = sadd.s32 4294967294, %s2341_s28  }
  0x1a   : > { %2944 = sst [smem:[#allocation14_spill]] %s2321_s23  ;;  %p65_p0 = scmp.ne.s32.totalorder %s2317_s22, %s2313_s21 }
  0x1b   : > { %2945 = sst [smem:[#allocation15_spill]] %s2329_s25  ;;  %p2485_p1 = scmp.eq.s32.totalorder %s1874_s29, 0 }
  0x1c   : > { %2946 = sst [smem:[#allocation16_spill]] %s2333_s26  ;;  %p2489_p2 = scmp.eq.s32.totalorder %s1874_s29, 3 }
  0x1d   : > { %2947 = sst [smem:[#allocation17_spill]] %s2337_s27  ;;  %p475_p3 = scmp.eq.s32.totalorder %s1875_s30, 3 }
  0x1e   : > { %2948 = sst [smem:[#allocation18_spill]] %s2341_s28  ;;  %p2495_p4 = por %p2485_p1, %p65_p0 }
  0x1f   : > { %s2949_s0 = scalar_select %p2485_p1, 1, 0 }
  0x20   : > { %s2950_s17 = scalar_select %p2489_p2, 1, 0 }
  0x21   : > { %s2951_s18 = scalar_select %p2495_p4, 1, 0 }
  0x22   : > { %p1876_p5 = scmp.ge.s32.totalorder %s2341_s28, 1  ;;  %p2500_p6 = por %p475_p3, %p65_p0 }
  0x23   : > { %p482_p7 = scmp.lt.s32.totalorder %s2341_s28, 5  ;;  %s2343_s29 = smov [#allocation6]  }
  0x24   : > { %s2952_s19 = scalar_select %p2500_p6, 1, 0 }
  0x25   : > { %p2505_p8 = pnand %p1876_p5, %p482_p7  ;;  %s498_s21 = sshll.u32 %s2343_s29, 4  ;;  %s499_s21 = int_to_ptr.vmem [resolvable:$true] %s498_s21 }
  0x26   : > { %2953 = sst [smem:[#allocation19_spill]] %s2952_s19  ;;  %s42_s16 = sadd.s32 1, %s2333_s26 }
  0x27   : > { %s2954_s20 = scalar_select %p2505_p8, 1, 0 }
  0x28   : > { %p2056_p9 = pneg %p2505_p8  ;;  %s2956_s3 = sld [smem:[#allocation26_spill]] }
  0x2a   : > { %p2513_p10 = pnand %p2056_p9, %p2485_p1 }
  0x2c   : > { %p2183_p12 = pneg %p2513_p10 }
  0x2e   : > { %s2181_s15 = scalar_lea.hbm %s2956_s3, 16 }
  0x2f   : > { %p2182_p11 = scmp.ne.s32.totalorder %s2956_s3, %s2181_s15  ;;  %p2188_p3 = scmp.lt.u32.totalorder %s2181_s15, %s2956_s3 }
  0x31   : > { %p2184_p13 = pnand %p2183_p12, %p2182_p11 }
  0x33   : > { %p2185_p0 = pneg %p2184_p13 }
  0x35   : > { %p2190_p5 = pnand %p2188_p3, %p2185_p0 }
  0x37   : > { %2193 = shalt.err (!%p2190_p5)
}
  0x38   : > { %s2194_s11 = scalar_lea.vmem %s499_s21, 16  ;;  %s2201_s2 = scalar_lea.vmem %s499_s21, 32 }
  0x39   : > { %p2195_p7 = scmp.ne.s32.totalorder %s499_s21, %s2194_s11  ;;  %p2202_p1 = scmp.lt.s32.totalorder %s499_s21, %s499_s21 }
  0x3a   : > { %p2203_p4 = scmp.lt.s32.totalorder %s2201_s2, %s2194_s11 }
  0x3b   : > { %p2197_p9 = pnand %p2195_p7, %p2183_p12 }
  0x3c   : > { %p2204_p8 = por %p2203_p4, %p2202_p1 }
  0x3d   : > { %p2198_p6 = pneg %p2197_p9 }
  0x3f   : > { %p2205_p2 = pnand %p2204_p8, %p2198_p6 }
  0x41   : > { %2208 = shalt.err (!%p2205_p2)
}
  0x42   : > { %2059 = dma.hbm_to_vmem [thread:$0]  (!%p2513_p10), %s2956_s3, 16, %s499_s21, [#allocation7]  }
  0x43   : > { %p43_p11 = scmp.ge.s32.totalorder %s42_s16, 2  ;;  %s45_s11 = sadd.s32 1, %s2337_s27 }
  0x44   : > { %s52_s12 = sadd.s32 1, %s2321_s23  ;;  %p59_p1 = scmp.ne.s32.totalorder %s2321_s23, %s2317_s22 }
  0x45   : > { %s3007_s16 = smov (%p43_p11, %s42_s16), 0  ;;  %s3009_s11 = smov (!%p43_p11, %s45_s11), %s2337_s27 }
  0x46   : > { %2957 = sst [smem:[#allocation20_spill]] %s3007_s16  ;;  %p60_p2 = scmp.eq.s32.totalorder %s2341_s28, 0 }
  0x47   : > { %p2958_p4 = scmp.ne.s32.totalorder %s2950_s17, 0  ;;  %p47_p8 = scmp.ge.s32.totalorder %s3009_s11, 2 }
  0x48   : > { %p2069_p12 = scmp.lt.s32.totalorder %s2341_s28, 4  ;;  %p61_p13 = por %p60_p2, %p59_p1 }
  0x49   : > { %p2544_p6 = por %p2958_p4, %p59_p1  ;;  %s509_s21 = sand.u32 1, %s2321_s23  }
  0x4a   : > { %s3011_s11 = smov (%p47_p8, %s3009_s11), 0  ;;  %s1879_s19 = sshll.u32 %s509_s21, 3 }
  0x4b   : > { %s2959_s15 = scalar_select %p2544_p6, 1, 0 }
  0x4c   : > { %2961 = sst [smem:[#allocation22_spill]] %s3011_s11  ;;  %s49_s30 = ssub.s32 %s2337_s27, %s3011_s11 }
  0x4d   : > { %2960 = sst [smem:[#allocation21_spill]] %s2959_s15  ;;  %p50_p10 = scmp.eq.s32.totalorder %s49_s30, 0 }
  0x4e   : > { %s1880_s29 = sshll.u32 %s2337_s27, 7  ;;  %s2962_s14 = sld [smem:[#allocation24_spill]] }
  0x4f   : > { %s513_s3 = scalar_lea.vmem [#allocation3], %s1879_s19  ;;  %p2567_p0 = pnand %p2069_p12, %p61_p13 }
  0x50   : > { %s520_s16 = sshll.u32 %s513_s3, 4  ;;  %s510_s30 = scalar_lea.sflag [#allocation4], %s509_s21  ;;  %s2563_s16 = int_to_ptr.vmem [resolvable:$true] %s520_s16 }
  0x51   : > { %s2561_s26 = scalar_select %p50_p10, %s2321_s23, %s52_s12  }
  0x52   : > { %p2211_p5 = pneg %p2567_p0 }
  0x53   : > { %2963 = sst [smem:[#allocation23_spill]] %s2561_s26 }
  0x54   : > { %s2558_s17 = scalar_lea.hbm %s2962_s14, %s1880_s29  ;;  %s2214_s19 = scalar_lea.hbm %s2962_s14, 256 }
  0x55   : > { %s2209_s29 = scalar_lea.hbm %s2558_s17, 128  ;;  %p2215_p11 = scmp.lt.u32.totalorder %s2558_s17, %s2962_s14 }
  0x56   : > { %p2210_p3 = scmp.ne.s32.totalorder %s2558_s17, %s2209_s29  ;;  %p2216_p1 = scmp.lt.u32.totalorder %s2214_s19, %s2209_s29 }
  0x57   : > { %p2218_p4 = scmp.lt.u32.totalorder %s2209_s29, %s2558_s17 }
  0x58   : > { %p2212_p7 = pnand %p2211_p5, %p2210_p3  ;;  %p2217_p2 = por %p2216_p1, %p2215_p11 }
  0x5a   : > { %p2213_p9 = pneg %p2212_p7  ;;  %p2219_p8 = por %p2218_p4, %p2217_p2 }
  0x5c   : > { %p2220_p12 = pnand %p2219_p8, %p2213_p9 }
  0x5e   : > { %2223 = shalt.err (!%p2220_p12)
}
  0x5f   : > { %s2224_s21 = scalar_lea.vmem %s2563_s16, 128  ;;  %s2344_s3 = smov [#allocation3]  }
  0x60   : > { %p2225_p13 = scmp.ne.s32.totalorder %s2563_s16, %s2224_s21  ;;  %s2229_s12 = sshll.u32 %s2344_s3, 4  ;;  %s2230_s12 = int_to_ptr.vmem [resolvable:$false] %s2229_s12 }
  0x61   : > { %s2231_s2 = scalar_lea.vmem %s2230_s12, 256  ;;  %p2232_p7 = scmp.lt.s32.totalorder %s2563_s16, %s2230_s12 }
  0x62   : > { %p2227_p10 = pnand %p2225_p13, %p2211_p5  ;;  %p2233_p11 = scmp.lt.s32.totalorder %s2231_s2, %s2224_s21 }
  0x64   : > { %p2228_p3 = pneg %p2227_p10  ;;  %p2234_p1 = por %p2233_p11, %p2232_p7 }
  0x66   : > { %p2235_p2 = pnand %p2234_p1, %p2228_p3 }
  0x68   : > { %2238 = shalt.err (!%p2235_p2)
}
  0x69   : > { %2063 = dma.hbm_to_vmem [thread:$0]  (!%p2567_p0), %s2558_s17, 128, %s2563_s16, %s510_s30  }
  0x6a   : > { %p2965_p9 = scmp.ne.s32.totalorder %s2954_s20, 0 }
  0x6b   : > { %s2599_s29 = sand.u32 (!%p2965_p9), 1, %s2317_s22   ;;  %p2966_p5 = scmp.ne.s32.totalorder (!%p2965_p9), %s2951_s18, 0 }
  0x6c   : > { %615 = sbr.rel (%p2965_p9) target bundleno = 2949 (0xb85), region = 84  ;;  %s1882_s19 = sshll.u32 (!%p2965_p9), %s2599_s29, 3 }
  0x6d   : > { %s618_s13 = scalar_lea.sflag (!%p2965_p9), [#allocation4], %s2599_s29  ;;  %s621_s21 = scalar_lea.vmem (!%p2965_p9), [#allocation3], %s1882_s19 }
  0x73   : > { %2300 = dma.done.wait (%p2966_p5), %s618_s13, 128  }
  0x74   : > { %2302 = vsyncadd (%p2966_p5), %s618_s13, 4294967168  ;;  %p2967_p4 = scmp.ne.s32.totalorder %s2949_s0, 0 }
  0x76   : > { %2304 = dma.done.wait (%p2967_p4), [#allocation7], 16  }
  0x77   : > { %2306 = vsyncadd (%p2967_p4), [#allocation7], 4294967280  ;;  %p720_p0 = scmp.lt.s32.totalorder %s2329_s25, 1  ;;  %p723_p8 = scmp.lt.s32.totalorder %s2325_s24, 1 }
  0x78   : > { %s2968_s4 = sld [smem:[#allocation27_spill]]  ;;  %s2969_s6 = sld [smem:[#allocation28_spill]] }
  0x79   : > { %s2614_s16 = scalar_select %p720_p0, %s2329_s25, 1 }
  0x7a   : > { %s2617_s20 = scalar_select %p723_p8, %s2325_s24, 1 }
  0x7b   : > { %s2973_s10 = sld [smem:[#allocation32_spill]]  ;;  %s2975_s23 = sld [smem:[#allocation34_spill]] }
  0x7c   : > { %s1930_s17 = sshll.u32 %s2617_s20, 4  ;;  %s1933_s25 = sshll.u32 %s2617_s20, 5 }
  0x7d   : > { %s2976_s28 = sld [smem:[#allocation35_spill]]  ;;  %s2977_s9 = sld [smem:[#allocation36_spill]] }
  0x7e   : > { %s2631_s13 = scalar_lea.vmem %s2968_s4, %s1930_s17  ;;  %s2636_s14 = scalar_lea.vmem %s2969_s6, %s1930_s17 }
  0x7f   : > { %s2974_s6 = sld [smem:[#allocation33_spill]]  ;;  %s719_s11 = scalar_lea.vmem [#allocation8], %s2599_s29 }
  0x80   : > { %p1892_p12 = scmp.ne.s32.totalorder %s2325_s24, 0 }
  0x81   : > { %s2653_s4 = scalar_lea.vmem %s2973_s10, %s1930_s17  ;;  %s2663_s7 = scalar_lea.vmem %s2975_s23, %s1933_s25  ;;  %v772_v0 = vld [vmem:[%s621_s21] sm:$0xff] (!%p1892_p12)  ;;  %vm775_vm0 = vcmask (!%p1892_p12), 261120   ;;  %v1894_v13 = vld [vmem:[#allocation6] ss:$0 sm:$0xff] (!%p1892_p12) }
  0x82   : > { %s2978_s10 = sld [smem:[#allocation37_spill]]  ;;  %771 = sbr.rel (%p1892_p12) target bundleno = 444 (0x1bc), region = 96  ;;  %v776_v1 = vsel (!%p1892_p12), %vm775_vm0, %v772_v0, 0.0 }
  0x83   : > { %s760_s30 = scalar_lea.vmem %s2976_s28, %s2617_s20  ;;  %s763_s2 = scalar_lea.vmem %s2977_s9, %s2617_s20  ;;  %777 = vadd.xlane.f32.xlu0 (!%p1892_p12), %v776_v1 }
  0x85   : > { %s752_s15 = scalar_lea.vmem %s2974_s6, %s2617_s20 }
  0x88   : > { %s766_s8 = scalar_lea.vmem %s2978_s10, %s2617_s20  ;;  %s2979_s10 = sld [smem:[#allocation25_spill]] (!%p1892_p12) }
  0x8e   : > { %v1893_v11 = vld [vmem:[%s2979_s10] ss:$0 sm:$0xff] }
 0x110   : > { %v778_v2 = vpop.xlane.xlu0 %777 }
 0x111   : > { %v780_v3 = vmul.f32 0.03125, %v778_v2 }
 0x113   : > { %v781_v4 = vsub.f32 %v772_v0, %v780_v3 }
 0x115   : > { %v782_v5 = vmul.f32 %v781_v4, %v781_v4 }
 0x117   : > { %v783_v6 = vsel %vm775_vm0, %v782_v5, 0.0 }
 0x118   : > { %784 = vadd.xlane.f32.xlu0 %v783_v6 }
 0x1a5   : > { %v785_v7 = vpop.xlane.xlu0 %784 }
 0x1a6   : > { %v786_v8 = vmul.f32 0.03125, %v785_v7 }
 0x1a8   : > { %v787_v9 = vadd.f32 1e-12, %v786_v8 }
 0x1aa   : > { %2147 = vrsqrt.f32 %v787_v9 }
 0x1b4   : > { %v2148_v10 = vpop.eup %2147 }
 0x1b5   : > { %v789_v12 = vmul.f32 %v2148_v10, %v781_v4 }
 0x1b7   : > { %v796_v14 = vmul.f32 %v1893_v11, %v789_v12 }
 0x1b9   : > { %v803_v15 = vadd.f32 %v1894_v13, %v796_v14 }
 0x1bb   : > { %804 = vst.msk [vmem:[#allocation2] sm:$0xff] %vm775_vm0, %v803_v15 }
 0x1bc PF: > { %v2149_v16 = vld [vmem:[%s2631_s13] sm:$0xff]   ;;  %v2345_v17 = vmov 0.0   ;;  %v2150_v18 = vld [vmem:[%s2631_s13 + $0x8] sm:$0xff]   ;;  %vm2346_vm1 = vmmov 0   ;;  %vm831_vm2 = vcmask 261120   ;;  %s2980_s28 = scalar_lea.vmem %s2896_s5, %s2617_s20  ;;  %s2347_s21 = smov 104  }
 0x1bd   : > { %1964 = vmatprep.subr.bf16.mxu0 %v2345_v17  ;;  %1972 = vmatprep.subr.bf16.mxu1 %v2345_v17  ;;  %v1895_v21 = vld [vmem:[%s2980_s28] ss:$0 sm:$0xff]  ;;  %s2348_s12 = smov 120   ;;  %s2349_s13 = smov 112   ;;  %vm898_vm3 = vcmask 64512   ;;  %vm1137_vm4 = vcmask 1043456  }
 0x1be   : > { %1965 = vmatpush3.bf16.msra.mxu0 %v2149_v16  ;;  %1968 = vmatprep.mubr.msk.bf16.mxu0 %vm2346_vm1, %v2345_v17  ;;  %s2350_s18 = smov 96   ;;  %s2351_s26 = smov 64   ;;  %vm1346_vm5 = vcmask 130048   ;;  %vm1348_vm6 = vcmask 195584   ;;  %vm1564_vm7 = vcmask 523264  }
 0x1bf   : > { %1966 = vmatprep.subr.bf16.mxu0 %v2345_v17  ;;  %1974 = vmatprep.mubr.msk.bf16.mxu1 %vm2346_vm1, %v2345_v17  ;;  %s2981_s0 = scalar_lea.vmem %s2892_s1, %s2614_s16  ;;  %s2352_s16 = smov 8  }
 0x1c0   : > { %v1899_v46 = vld [vmem:[%s2981_s0] ss:$0 sm:$0xff]  ;;  %s2353_s3 = smov 16   ;;  %s2982_s6 = sld [smem:[#allocation29_spill]] }
 0x1c1   : > { %s2984_s25 = sld [smem:[#allocation30_spill]]  ;;  %p1926_p13 = scmp.ne.s32.totalorder %s2325_s24, 1 }
 0x1c2   : > { %v2691_v19 = vld [vmem:[#allocation2] sm:$0xff]  ;;  %1967 = vmatpush3.bf16.msra.mxu0 %v2150_v18  ;;  %vm1643_vm8 = vcmask (!%p1926_p13), 253952  }
 0x1c3   : > { %v807_v20 = vpack.c.bf16 %v2691_v19, %v2691_v19  ;;  %1978 = vmatprep.subr.bf16.mxu0 %v2345_v17 }
 0x1c5   : > { %1969 = vmatmul.mubr.msk.bf16.vlgmr.msra.gmra.mrb[0].mxu0 %vm831_vm2, %v807_v20 }
 0x1c6   : > { %1980 = vmatprep.mubr.msk.bf16.mxu0 %vm2346_vm1, %v2345_v17  ;;  %s2983_s9 = scalar_lea.vmem %s2982_s6, %s2617_s20 }
 0x1c7   : > { %s2985_s28 = scalar_lea.vmem %s2984_s25, %s2617_s20 }
 0x298   : > { %v869_v22 = vpop.f32.mrb[0].mxu0 }
 0x299   : > { %v870_v23 = vadd.f32 %v1895_v21, %v869_v22  ;;  %v1970_v24 = vpop.f32.mrb[1].mxu0 }
 0x29a   : > { %v872_v25 = vpop.f32.mrb[2].mxu0 }
 0x29b   : > { %882 = vrot.lane.b32.xlu1 %v870_v23, %s2347_s21  ;;  %876 = vrot.lane.b32.xlu0 %v870_v23, %s2348_s12  ;;  %v1971_v26 = vpop.f32.mrb[3].mxu0  ;;  %v885_v27 = vpack.c.bf16 %v870_v23, %v870_v23 }
 0x29f   : > { %879 = vrot.lane.b32.xlu0 %v870_v23, %s2349_s13  ;;  %896 = vrot.lane.b32.xlu1 %v885_v27, %s2350_s18 }
 0x30d   : > { %v883_v28 = vpop.permute.xlu1 %882  ;;  %v877_v29 = vpop.permute.xlu0 %876 }
 0x30e   : > { %v886_v30 = vpack.c.bf16 %v877_v29, %v877_v29  ;;  %v2707_v33 = vpack.c.bf16 %v883_v28, %v883_v28 }
 0x310   : > { %946 = vrot.lane.b32.xlu0 %v886_v30, %s2350_s18 }
 0x311   : > { %v880_v31 = vpop.permute.xlu0 %879  ;;  %v897_v32 = vpop.permute.xlu1 %896 }
 0x312   : > { %v2709_v34 = vpack.c.bf16 %v880_v31, %v880_v31  ;;  %v903_v35 = vsel %vm898_vm3, %v897_v32, 0 }
 0x313   : > { %1973 = vmatpush3.bf16.xpose.msra.mxu1 %v903_v35 }
 0x314   : > { %1044 = vrot.lane.b32.xlu0 %v2707_v33, %s2350_s18  ;;  %995 = vrot.lane.b32.xlu1 %v2709_v34, %s2350_s18 }
 0x315   : > { %1984 = vmatprep.subr.bf16.mxu1 %v2345_v17 }
 0x318   : > { %1132 = vrot.lane.b32.xlu0 %v885_v27, %s2351_s26  ;;  %1181 = vrot.lane.b32.xlu1 %v886_v30, %s2351_s26 }
 0x31a   : > { %1975 = vmatmul.mubr.msk.bf16.vlgmr.msra.gmra.mrb[0].mxu1 %vm898_vm3, %v885_v27 }
 0x31b   : > { %1986 = vmatprep.mubr.msk.bf16.mxu1 %vm2346_vm1, %v2345_v17 }
 0x382   : > { %v947_v36 = vpop.permute.xlu0 %946 }
 0x383   : > { %v952_v37 = vsel %vm898_vm3, %v947_v36, 0 }
 0x384   : > { %1979 = vmatpush3.bf16.xpose.msra.mxu0 %v952_v37 }
 0x385   : > { %1990 = vmatprep.subr.bf16.mxu0 %v2345_v17 }
 0x386   : > { %v1045_v38 = vpop.permute.xlu0 %1044  ;;  %v996_v39 = vpop.permute.xlu1 %995 }
 0x387   : > { %v1001_v40 = vsel %vm898_vm3, %v996_v39, 0  ;;  %v1050_v41 = vsel %vm898_vm3, %v1045_v38, 0 }
 0x388   : > { %1985 = vmatpush3.bf16.xpose.msra.mxu1 %v1001_v40 }
 0x389   : > { %1996 = vmatprep.subr.bf16.mxu1 %v2345_v17 }
 0x38a   : > { %v1133_v42 = vpop.permute.xlu0 %1132  ;;  %v1182_v44 = vpop.permute.xlu1 %1181 }
 0x38b   : > { %1981 = vmatmul.mubr.msk.bf16.vlgmr.msra.gmra.mrb[4].mxu0 %vm898_vm3, %v886_v30  ;;  %v1139_v43 = vsel %vm1137_vm4, %v1133_v42, 0  ;;  %v1187_v45 = vsel %vm1137_vm4, %v1182_v44, 0 }
 0x38c   : > { %1991 = vmatpush3.bf16.xpose.msra.mxu0 %v1050_v41  ;;  %1992 = vmatprep.mubr.msk.bf16.mxu0 %vm2346_vm1, %v2345_v17 }
 0x38d   : > { %2002 = vmatprep.subr.bf16.mxu0 %v2345_v17 }
 0x38f   : > { %1987 = vmatmul.mubr.msk.bf16.vlgmr.msra.gmra.mrb[4].mxu1 %vm898_vm3, %v2709_v34 }
 0x390   : > { %1997 = vmatpush3.bf16.msra.mxu1 %v1139_v43  ;;  %1998 = vmatprep.mubr.msk.bf16.mxu1 %vm2346_vm1, %v2345_v17  ;;  %v2151_v43 = vld [vmem:[%s2636_s14] sm:$0xff]  }
 0x391   : > { %2008 = vmatprep.subr.bf16.mxu1 %v2345_v17 }
 0x393   : > { %1993 = vmatmul.mubr.msk.bf16.vlgmr.msra.gmra.mrb[8].mxu0 %vm898_vm3, %v2707_v33 }
 0x394   : > { %2003 = vmatpush3.bf16.msra.mxu0 %v1187_v45  ;;  %2004 = vmatprep.mubr.msk.bf16.mxu0 %vm2346_vm1, %v2345_v17  ;;  %v2152_v45 = vld [vmem:[%s2636_s14 + $0x8] sm:$0xff]   ;;  %s2354_s14 = smov 24  }
 0x395   : > { %2014 = vmatprep.subr.bf16.mxu0 %v2345_v17 }
 0x3ed   : > { %v939_v47 = vpop.f32.mrb[0].mxu1 }
 0x3ee   : > { %v940_v48 = vadd.f32 %v1899_v46, %v939_v47  ;;  %v1976_v49 = vpop.f32.mrb[1].mxu1 }
 0x3ef   : > { %v942_v50 = vpop.f32.mrb[2].mxu1 }
 0x3f0   : > { %v1977_v51 = vpop.f32.mrb[3].mxu1  ;;  %v1092_v52 = vsel %vm898_vm3, %v940_v48, -inf }
 0x3f1   : > { %1093 = vmax.xlane.f32.xlu1 %v1092_v52 }
 0x45e   : > { %v988_v53 = vpop.f32.mrb[4].mxu0 }
 0x45f   : > { %v989_v54 = vadd.f32 %v1899_v46, %v988_v53  ;;  %v1982_v55 = vpop.f32.mrb[5].mxu0 }
 0x460   : > { %v991_v56 = vpop.f32.mrb[6].mxu0 }
 0x461   : > { %v1983_v57 = vpop.f32.mrb[7].mxu0  ;;  %v1095_v58 = vsel %vm898_vm3, %v989_v54, -inf }
 0x462   : > { %v1037_v59 = vpop.f32.mrb[4].mxu1  ;;  %1096 = vmax.xlane.f32.xlu0 %v1095_v58 }
 0x463   : > { %v1038_v60 = vadd.f32 %v1899_v46, %v1037_v59  ;;  %v1988_v61 = vpop.f32.mrb[5].mxu1 }
 0x464   : > { %v1040_v62 = vpop.f32.mrb[6].mxu1 }
 0x465   : > { %v1989_v63 = vpop.f32.mrb[7].mxu1  ;;  %v1098_v0 = vsel %vm898_vm3, %v1038_v60, -inf }
 0x466   : > { %1099 = vmax.xlane.f32.xlu0 %v1098_v0  ;;  %v1086_v1 = vpop.f32.mrb[8].mxu0 }
 0x467   : > { %v1087_v2 = vadd.f32 %v1899_v46, %v1086_v1  ;;  %v1994_v3 = vpop.f32.mrb[9].mxu0 }
 0x468   : > { %v1089_v4 = vpop.f32.mrb[10].mxu0 }
 0x469   : > { %v1995_v5 = vpop.f32.mrb[11].mxu0  ;;  %v1101_v6 = vsel %vm898_vm3, %v1087_v2, -inf }
 0x46a   : > { %1102 = vmax.xlane.f32.xlu1 %v1101_v6 }
 0x47b   : > { %1229 = vrot.lane.b32.xlu1 %v2709_v34, %s2351_s26 }
 0x47c   : > { %1277 = vrot.lane.b32.xlu0 %v2707_v33, %s2351_s26 }
 0x47e   : > { %v1094_v7 = vpop.xlane.xlu1 %1093 }
 0x47f   : > { %v1104_v8 = vsub.f32 %v940_v48, %v1094_v7 }
 0x481   : > { %v1108_v9 = vmul.f32 1.442695, %v1104_v8 }
 0x483   : > { %2159 = vpow2.f32 %v1108_v9 }
 0x48d   : > { %v2160_v10 = vpop.eup %2159 }
 0x48e   : > { %v1128_v11 = vpack.c.bf16 %v2160_v10, %v2160_v10  ;;  %v1116_v32 = vsel %vm898_vm3, %v2160_v10, 0.0  ;;  %v1908_v10 = vld [vmem:[%s2983_s9] ss:$0 sm:$0xff] }
 0x490   : > { %1999 = vmatmul.mubr.msk.bf16.vlgmr.msra.gmra.mrb[8].mxu1 %vm898_vm3, %v1128_v11 }
 0x491   : > { %2010 = vmatprep.mubr.msk.bf16.mxu1 %vm2346_vm1, %v2345_v17 }
 0x4ef   : > { %v1097_v12 = vpop.xlane.xlu0 %1096 }
 0x4f0   : > { %v1105_v13 = vsub.f32 %v989_v54, %v1097_v12 }
 0x4f2   : > { %v1110_v14 = vmul.f32 1.442695, %v1105_v13 }
 0x4f3   : > { %v1100_v15 = vpop.xlane.xlu0 %1099 }
 0x4f4   : > { %2161 = vpow2.f32 %v1110_v14  ;;  %v1106_v16 = vsub.f32 %v1038_v60, %v1100_v15 }
 0x4f6   : > { %v1112_v18 = vmul.f32 1.442695, %v1106_v16 }
 0x4f7   : > { %v1103_v20 = vpop.xlane.xlu1 %1102  ;;  %v1278_v26 = vpop.permute.xlu0 %1277 }
 0x4f8   : > { %2163 = vpow2.f32 %v1112_v18  ;;  %v1107_v21 = vsub.f32 %v1087_v2, %v1103_v20  ;;  %v1283_v29 = vsel %vm1137_vm4, %v1278_v26, 0  ;;  %v2154_v26 = vld [vmem:[%s2653_s4 + $0x8] sm:$0xff]  }
 0x4fa   : > { %v1114_v22 = vmul.f32 1.442695, %v1107_v21 }
 0x4fb   : > { %v1230_v23 = vpop.permute.xlu1 %1229 }
 0x4fc   : > { %2165 = vpow2.f32 %v1114_v22  ;;  %v1235_v24 = vsel %vm1137_vm4, %v1230_v23, 0 }
 0x4fd   : > { %2009 = vmatpush3.bf16.msra.mxu1 %v1235_v24 }
 0x4fe   : > { %v2162_v25 = vpop.eup %2161  ;;  %2020 = vmatprep.subr.bf16.mxu1 %v2345_v17 }
 0x4ff   : > { %v1119_v27 = vsel %vm898_vm3, %v2162_v25, 0.0  ;;  %v1129_v28 = vpack.c.bf16 %v2162_v25, %v2162_v25  ;;  %v2153_v25 = vld [vmem:[%s2653_s4] sm:$0xff]   ;;  %s2986_s4 = sld [smem:[#allocation31_spill]] }
 0x500   : > { %1120 = vadd.xlane.f32.xlu1 %v1119_v27 }
 0x501   : > { %2005 = vmatmul.mubr.msk.bf16.vlgmr.msra.gmra.mrb[12].mxu0 %vm898_vm3, %v1129_v28 }
 0x502   : > { %v2164_v30 = vpop.eup %2163  ;;  %2015 = vmatpush3.bf16.msra.mxu0 %v1283_v29  ;;  %2016 = vmatprep.mubr.msk.bf16.mxu0 %vm2346_vm1, %v2345_v17 }
 0x503   : > { %v1122_v31 = vsel %vm898_vm3, %v2164_v30, 0.0  ;;  %v1130_v33 = vpack.c.bf16 %v2164_v30, %v2164_v30  ;;  %2028 = vmatprep.subr.bf16.mxu0 %v2345_v17  ;;  %v1912_v30 = vld [vmem:[%s2985_s28] ss:$0 sm:$0xff] }
 0x504   : > { %1123 = vadd.xlane.f32.xlu0 %v1122_v31  ;;  %1117 = vadd.xlane.f32.xlu1 %v1116_v32 }
 0x505   : > { %2011 = vmatmul.mubr.msk.bf16.vlgmr.msra.gmra.mrb[12].mxu1 %vm898_vm3, %v1130_v33  ;;  %s2987_s13 = scalar_lea.vmem %s2986_s4, %s2617_s20 }
 0x506   : > { %v2166_v34 = vpop.eup %2165  ;;  %2024 = vmatprep.mubr.msk.bf16.mxu1 %vm2346_vm1, %v2345_v17  ;;  %2021 = vmatpush3.bf16.msra.mxu1 %v2151_v43  ;;  %v1913_v32 = vld [vmem:[%s2987_s13] ss:$0 sm:$0xff] }
 0x507   : > { %v1125_v35 = vsel %vm898_vm3, %v2166_v34, 0.0  ;;  %v1131_v36 = vpack.c.bf16 %v2166_v34, %v2166_v34  ;;  %2022 = vmatprep.subr.bf16.mxu1 %v2345_v17 }
 0x508   : > { %1126 = vadd.xlane.f32.xlu0 %v1125_v35 }
 0x509   : > { %2017 = vmatmul.mubr.msk.bf16.vlgmr.msra.gmra.mrb[16].mxu0 %vm898_vm3, %v1131_v36  ;;  %v2155_v36 = vld [vmem:[%s2663_s7] sm:$0xff]  }
 0x50a   : > { %2032 = vmatprep.mubr.msk.bf16.mxu0 %vm2346_vm1, %v2345_v17  ;;  %2023 = vmatpush3.bf16.msra.mxu1 %v2152_v45 }
 0x50b   : > { %2036 = vmatprep.subr.bf16.mxu1 %v2345_v17  ;;  %2029 = vmatpush3.bf16.msra.mxu0 %v2153_v25 }
 0x50c   : > { %2030 = vmatprep.subr.bf16.mxu0 %v2345_v17 }
 0x50f   : > { %2031 = vmatpush3.bf16.msra.mxu0 %v2154_v26 }
 0x563   : > { %v1175_v37 = vpop.f32.mrb[8].mxu1 }
 0x564   : > { %v2000_v38 = vpop.f32.mrb[9].mxu1 }
 0x565   : > { %v1178_v39 = vpop.f32.mrb[10].mxu1  ;;  %v2157_v38 = vld [vmem:[%s2663_s7 + $0x10] sm:$0xff]  }
 0x566   : > { %v2001_v40 = vpop.f32.mrb[11].mxu1  ;;  %v2158_v39 = vld [vmem:[%s2663_s7 + $0x18] sm:$0xff]  }
 0x567   : > { %v1914_v40 = vld [vmem:[%s752_s15] ss:$0 sm:$0xff] }
 0x58d   : > { %v1121_v41 = vpop.xlane.xlu1 %1120 }
 0x58e   : > { %2167 = vrcp.f32 %v1121_v41 }
 0x591   : > { %v1124_v42 = vpop.xlane.xlu0 %1123  ;;  %v1118_v0 = vpop.xlane.xlu1 %1117 }
 0x592   : > { %2169 = vrcp.f32 %v1124_v42 }
 0x595   : > { %v1127_v44 = vpop.xlane.xlu0 %1126 }
 0x596   : > { %2171 = vrcp.f32 %v1127_v44 }
 0x597   : > { %2173 = vrcp.f32 %v1118_v0 }
 0x598   : > { %v2168_v46 = vpop.eup %2167 }
 0x59c   : > { %v2170_v52 = vpop.eup %2169 }
 0x5a0   : > { %v2172_v58 = vpop.eup %2171 }
 0x5a1   : > { %v2174_v1 = vpop.eup %2173 }
 0x5a2   : > { %v1326_v4 = vmul.f32 %v2174_v1, %v1175_v37  ;;  %v2156_v37 = vld [vmem:[%s2663_s7 + $0x8] sm:$0xff]  }
 0x5d4   : > { %v1223_v47 = vpop.f32.mrb[12].mxu0 }
 0x5d5   : > { %v1328_v48 = vmul.f32 %v2168_v46, %v1223_v47  ;;  %v2006_v49 = vpop.f32.mrb[13].mxu0 }
 0x5d6   : > { %v1226_v50 = vpop.f32.mrb[14].mxu0 }
 0x5d7   : > { %1334 = vrot.lane.b32.xlu0 %v1328_v48, %s2352_s16  ;;  %v2007_v51 = vpop.f32.mrb[15].mxu0 }
 0x5d8   : > { %v1271_v53 = vpop.f32.mrb[12].mxu1 }
 0x5d9   : > { %v1330_v54 = vmul.f32 %v2170_v52, %v1271_v53  ;;  %v2012_v55 = vpop.f32.mrb[13].mxu1 }
 0x5da   : > { %v1274_v56 = vpop.f32.mrb[14].mxu1  ;;  %v1918_v55 = vld [vmem:[%s760_s30] ss:$0 sm:$0xff] }
 0x5db   : > { %1338 = vrot.lane.b32.xlu1 %v1330_v54, %s2353_s3  ;;  %v2013_v57 = vpop.f32.mrb[15].mxu1 }
 0x5dc   : > { %v1319_v59 = vpop.f32.mrb[16].mxu0 }
 0x5dd   : > { %v1332_v60 = vmul.f32 %v2172_v58, %v1319_v59  ;;  %v2018_v61 = vpop.f32.mrb[17].mxu0 }
 0x5de   : > { %v1322_v62 = vpop.f32.mrb[18].mxu0 }
 0x5df   : > { %1342 = vrot.lane.b32.xlu1 %v1332_v60, %s2354_s14  ;;  %v2019_v63 = vpop.f32.mrb[19].mxu0 }
 0x649   : > { %v1335_v2 = vpop.permute.xlu0 %1334 }
 0x64a   : > { %v1345_v5 = vsel %vm898_vm3, %v1326_v4, %v1335_v2 }
 0x64d   : > { %v1339_v3 = vpop.permute.xlu1 %1338 }
 0x64e   : > { %v1347_v6 = vsel %vm1346_vm5, %v1345_v5, %v1339_v3 }
 0x651   : > { %v1343_v7 = vpop.permute.xlu1 %1342 }
 0x652   : > { %v1349_v8 = vsel %vm1348_vm6, %v1347_v6, %v1343_v7 }
 0x653   : > { %v1350_v9 = vpack.c.bf16 %v1349_v8, %v1349_v8  ;;  %v1924_v8 = vld [vmem:[%s763_s2] ss:$0 sm:$0xff] }
 0x655   : > { %2025 = vmatmul.mubr.msk.bf16.vlgmr.msra.gmra.mrb[16].mxu1 %vm831_vm2, %v1350_v9 }
 0x656   : > { %2044 = vmatprep.mubr.msk.bf16.mxu1 %vm2346_vm1, %v2345_v17  ;;  %2037 = vmatpush3.bf16.msra.mxu1 %v2155_v36 }
 0x657   : > { %2038 = vmatprep.subr.bf16.mxu1 %v2345_v17 }
 0x65a   : > { %2039 = vmatpush3.bf16.msra.mxu1 %v2156_v37 }
 0x65b   : > { %2040 = vmatprep.subr.bf16.mxu1 %v2345_v17 }
 0x65e   : > { %2041 = vmatpush3.bf16.msra.mxu1 %v2157_v38 }
 0x65f   : > { %2042 = vmatprep.subr.bf16.mxu1 %v2345_v17 }
 0x662   : > { %2043 = vmatpush3.bf16.msra.mxu1 %v2158_v39 }
 0x728   : > { %v1411_v11 = vpop.f32.mrb[16].mxu1 }
 0x729   : > { %v1412_v12 = vadd.f32 %v1908_v10, %v1411_v11  ;;  %v2026_v13 = vpop.f32.mrb[17].mxu1  ;;  %v1925_v10 = vld [vmem:[%s766_s8] ss:$0 sm:$0xff] }
 0x72a   : > { %v1414_v14 = vpop.f32.mrb[18].mxu1 }
 0x72b   : > { %v2027_v15 = vpop.f32.mrb[19].mxu1  ;;  %v1417_v16 = vadd.f32 %v1412_v12, %v2691_v19 }
 0x72d   : > { %v1420_v18 = vsel %vm831_vm2, %v1417_v16, 0.0 }
 0x72e   : > { %1421 = vadd.xlane.f32.xlu0 %v1420_v18 }
 0x7bb   : > { %v1422_v20 = vpop.xlane.xlu0 %1421 }
 0x7bc   : > { %v1424_v21 = vmul.f32 0.03125, %v1422_v20 }
 0x7be   : > { %v1425_v22 = vsub.f32 %v1417_v16, %v1424_v21 }
 0x7c0   : > { %v1426_v23 = vmul.f32 %v1425_v22, %v1425_v22 }
 0x7c2   : > { %v1427_v24 = vsel %vm831_vm2, %v1426_v23, 0.0 }
 0x7c3   : > { %1428 = vadd.xlane.f32.xlu1 %v1427_v24 }
 0x850   : > { %v1429_v19 = vpop.xlane.xlu1 %1428 }
 0x851   : > { %v1430_v27 = vmul.f32 0.03125, %v1429_v19 }
 0x853   : > { %v1431_v28 = vadd.f32 1e-12, %v1430_v27 }
 0x855   : > { %2175 = vrsqrt.f32 %v1431_v28 }
 0x85f   : > { %v2176_v29 = vpop.eup %2175 }
 0x860   : > { %v1433_v31 = vmul.f32 %v2176_v29, %v1425_v22 }
 0x862   : > { %v1440_v33 = vmul.f32 %v1912_v30, %v1433_v31 }
 0x864   : > { %v1447_v34 = vadd.f32 %v1913_v32, %v1440_v33 }
 0x866   : > { %v1448_v35 = vpack.c.bf16 %v1447_v34, %v1447_v34 }
 0x868   : > { %2033 = vmatmul.mubr.msk.bf16.vlgmr.msra.gmra.mrb[20].mxu0 %vm831_vm2, %v1448_v35 }
 0x93b   : > { %v1509_v41 = vpop.f32.mrb[20].mxu0 }
 0x93c   : > { %v1510_v42 = vadd.f32 %v1914_v40, %v1509_v41  ;;  %v2034_v43 = vpop.f32.mrb[21].mxu0 }
 0x93d   : > { %v1512_v44 = vpop.f32.mrb[22].mxu0 }
 0x93e   : > { %v1516_v45 = vmul.f32 0.044715, %v1510_v42  ;;  %v2035_v46 = vpop.f32.mrb[23].mxu0  ;;  %v1515_v17 = vmul.f32 0.5, %v1510_v42 }
 0x940   : > { %v1517_v47 = vmul.f32 %v1516_v45, %v1510_v42 }
 0x942   : > { %v1518_v48 = vmul.f32 %v1517_v47, %v1510_v42 }
 0x944   : > { %v1519_v49 = vadd.f32 %v1518_v48, %v1510_v42 }
 0x946   : > { %v1520_v50 = vmul.f32 0.7978846, %v1519_v49 }
 0x948   : > { %2177 = vtanh.f32 %v1520_v50 }
 0x952   : > { %v2178_v51 = vpop.eup %2177 }
 0x953   : > { %v1522_v52 = vadd.f32 1.0, %v2178_v51 }
 0x955   : > { %v1523_v53 = vmul.f32 %v1522_v52, %v1515_v17 }
 0x957   : > { %v1524_v54 = vpack.c.bf16 %v1523_v53, %v1523_v53 }
 0x959   : > { %2045 = vmatmul.mubr.msk.bf16.vlgmr.msra.gmra.mrb[20].mxu1 %vm1564_vm7, %v1524_v54 }
 0xa2c   : > { %v1602_v56 = vpop.f32.mrb[20].mxu1 }
 0xa2d   : > { %v1603_v57 = vadd.f32 %v1918_v55, %v1602_v56  ;;  %v2046_v58 = vpop.f32.mrb[21].mxu1 }
 0xa2e   : > { %v1605_v59 = vpop.f32.mrb[22].mxu1 }
 0xa2f   : > { %v2047_v60 = vpop.f32.mrb[23].mxu1  ;;  %v1608_v61 = vadd.f32 %v1603_v57, %v1447_v34 }
 0xa31   : > { %v1611_v62 = vsel %vm831_vm2, %v1608_v61, 0.0 }
 0xa32   : > { %1612 = vadd.xlane.f32.xlu0 %v1611_v62 }
 0xabf   : > { %v1613_v63 = vpop.xlane.xlu0 %1612 }
 0xac0   : > { %v1614_v0 = vmul.f32 0.03125, %v1613_v63 }
 0xac2   : > { %v1615_v1 = vsub.f32 %v1608_v61, %v1614_v0 }
 0xac4   : > { %v1616_v2 = vmul.f32 %v1615_v1, %v1615_v1 }
 0xac6   : > { %v1617_v3 = vsel %vm831_vm2, %v1616_v2, 0.0 }
 0xac7   : > { %1618 = vadd.xlane.f32.xlu0 %v1617_v3 }
 0xb54   : > { %v1619_v4 = vpop.xlane.xlu0 %1618 }
 0xb55   : > { %v1620_v5 = vmul.f32 0.03125, %v1619_v4 }
 0xb57   : > { %v1621_v6 = vadd.f32 1e-12, %v1620_v5 }
 0xb59   : > { %2179 = vrsqrt.f32 %v1621_v6 }
 0xb63   : > { %v2180_v7 = vpop.eup %2179 }
 0xb64   : > { %v1623_v9 = vmul.f32 %v2180_v7, %v1615_v1  ;;  %1642 = sbr.rel (%p1926_p13) target bundleno = 2924 (0xb6c), region = 100 }
 0xb66   : > { %v1630_v11 = vmul.f32 %v1924_v8, %v1623_v9 }
 0xb68   : > { %v1637_v12 = vadd.f32 %v1925_v10, %v1630_v11 }
 0xb6a   : > { %1638 = vst.msk [vmem:[#allocation2] sm:$0xff] %vm831_vm2, %v1637_v12 }
 0xb6b   : > { %1644 = vst.msk [vmem:[%s719_s11] sm:$0x1] %vm1643_vm8, %v1637_v12 }
 0xb6c PF: > { %s2992_s19 = sld [smem:[#allocation15_spill]]  ;;  %s2994_s8 = sld [smem:[#allocation38_spill]] }
 0xb6d   : > { %s1658_s23 = sshll.u32 %s719_s11, 4  ;;  %s1646_s24 = scalar_lea.sflag [#allocation5], %s2599_s29  ;;  %s1659_s23 = int_to_ptr.vmem [resolvable:$true] %s1658_s23 }
 0xb6e   : > { %s2239_s25 = scalar_lea.vmem %s1659_s23, 16  ;;  %s2355_s28 = smov [#allocation8]  }
 0xb6f   : > { %p2240_p10 = scmp.ne.s32.totalorder %s1659_s23, %s2239_s25  ;;  %s2243_s21 = sshll.u32 %s2355_s28, 4  ;;  %s2244_s21 = int_to_ptr.vmem [resolvable:$false] %s2243_s21 }
 0xb70   : > { %s2245_s12 = scalar_lea.vmem %s2244_s21, 32  ;;  %p2246_p11 = scmp.lt.s32.totalorder %s1659_s23, %s2244_s21 }
 0xb71   : > { %p2241_p3 = pnand %p2240_p10, %p2544_p6  ;;  %p2247_p1 = scmp.lt.s32.totalorder %s2245_s12, %s2239_s25 }
 0xb72   : > { %s1927_s6 = sshll.u32 %s2992_s19, 4 }
 0xb73   : > { %s2841_s10 = scalar_lea.hbm %s2994_s8, %s1927_s6  ;;  %p2242_p7 = pneg %p2241_p3 }
 0xb74   : > { %p2248_p2 = por %p2247_p1, %p2246_p11 }
 0xb76   : > { %p2249_p9 = pnand %p2248_p2, %p2242_p7 }
 0xb78   : > { %2252 = shalt.err (!%p2249_p9)
}
 0xb79   : > { %s2253_s29 = scalar_lea.hbm %s2841_s10, 16  ;;  %s2257_s13 = scalar_lea.hbm %s2994_s8, 32 }
 0xb7a   : > { %p2254_p5 = scmp.ne.s32.totalorder %s2841_s10, %s2253_s29  ;;  %p2258_p8 = scmp.lt.u32.totalorder %s2841_s10, %s2994_s8 }
 0xb7b   : > { %p2259_p12 = scmp.lt.u32.totalorder %s2257_s13, %s2253_s29  ;;  %p2261_p10 = scmp.lt.u32.totalorder %s2253_s29, %s2841_s10 }
 0xb7c   : > { %p2255_p4 = pnand %p2254_p5, %p2544_p6 }
 0xb7d   : > { %p2260_p13 = por %p2259_p12, %p2258_p8 }
 0xb7e   : > { %p2256_p0 = pneg %p2255_p4 }
 0xb7f   : > { %p2262_p3 = por %p2261_p10, %p2260_p13 }
 0xb81   : > { %p2263_p7 = pnand %p2262_p3, %p2256_p0 }
 0xb83   : > { %2266 = shalt.err (!%p2263_p7)
}
 0xb84   : > { %2054 = dma.vmem_to_hbm [thread:$0]  (%p2544_p6), %s1659_s23, 16, %s2841_s10, %s1646_s24  }
 0xb85 PF: > { %s2995_s27 = sld [smem:[#allocation18_spill]]  ;;  %s2996_s7 = sld [smem:[#allocation12_spill]] }
 0xb86   : > { %s2997_s15 = sld [smem:[#allocation19_spill]] }
 0xb8b   : > { %p2071_p11 = scmp.ge.s32.totalorder %s2995_s27, 2  ;;  %s1670_s22 = sand.u32 1, %s2996_s7  }
 0xb8c   : > { %p2998_p1 = scmp.ne.s32.totalorder %s2997_s15, 0  ;;  %s1671_s30 = scalar_lea.sflag [#allocation5], %s1670_s22 }
 0xb8e   : > { %p2065_p2 = pnand %p2071_p11, %p2998_p1 }
 0xb90   : > { %2308 = dma.done.wait (!%p2065_p2), %s1671_s30, 16  }
 0xb91   : > { %2310 = vsyncadd (!%p2065_p2), %s1671_s30, 4294967280  ;;  %s33_s28 = sadd.s32 1, %s2995_s27   ;;  %s2999_s21 = sld [smem:[#allocation13_spill]] }
 0xb92   : > { %p30_p9 = scmp.ge.s32.totalorder %s33_s28, 6   ;;  %s3000_s22 = sld [smem:[#allocation14_spill]] }
 0xb93   : > { %s3001_s23 = sld [smem:[#allocation23_spill]]  ;;  %s3002_s24 = sld [smem:[#allocation16_spill]] }
 0xb94   : > { %s3003_s25 = sld [smem:[#allocation17_spill]]  ;;  %s3004_s26 = sld [smem:[#allocation20_spill]] }
 0xb95   : > { %s3005_s27 = sld [smem:[#allocation22_spill]]  ;;  %32 = sbr.rel (!%p30_p9) target bundleno = 24 (0x18), region = 180 }
 0xb9c   :  { %1675 = vsyncpa [#allocation4], 1 }
 0xb9d   :  { %1677 = vsyncpa [#allocation4 + $0x1], 1 }
 0xb9e   :  { %1678 = vsyncpa [#allocation7], 1 }
 0xb9f   :  { %1679 = vsyncpa [#allocation5], 1 }
 0xba0   :  { %1681 = vsyncpa [#allocation5 + $0x1], 1 }

</bundles_post_ra>
